<compile_context>
chip_gen: v7x
topology: tpu7x:2x2x1
jax: 0.10.0
libtpu: 0.0.40
codegen_flags: <defaults>
</compile_context>

<pallas_src>
import functools

import jax
import jax.numpy as jnp
from jax.experimental import pallas as pl
from jax.experimental.pallas import tpu as pltpu

# Small stand-in for the original SENSOR_SIZE = (256, 160); (W, H) convention.
SENSOR_SIZE = (32, 32)
INPUT_CHANNELS = 6
FEATURE_DIM = 128          # constructor arg (default 512), small for the demo
GOAL_VEC_DIM = 2
ACTION_DIM = 2
P1_DIM = 256
P2_DIM = 128

CONV_M_TILE = 512          # row tile for the im2col conv matmuls


def _round_up(x, m):
    return ((x + m - 1) // m) * m


# ---------------------------------------------------------------------------
# Generation-aware VMEM sizing
# ---------------------------------------------------------------------------
@functools.lru_cache(maxsize=None)
def _physical_vmem_bytes():
    get_info = getattr(pltpu, "get_tpu_info", None)
    if get_info is not None:
        try:
            info = get_info()
            for attr in ("vmem_capacity_bytes", "vmem_bytes", "vmem_size_bytes"):
                v = getattr(info, attr, None)
                if isinstance(v, int) and v > 0:
                    return v
        except Exception:
            pass
    return 64 * 1024 * 1024  # conservative default (v7x per-TC VMEM)


def _head_vmem_budget():
    """Returns (per-fc-buffer byte budget, vmem_limit_bytes) per TPU generation."""
    cap = _physical_vmem_bytes()
    if cap >= 96 * 1024 * 1024:            # v5e / v6e: 128 MiB physical VMEM
        return 12 * 1024 * 1024, 48 * 1024 * 1024
    return 6 * 1024 * 1024, 28 * 1024 * 1024   # v7x: 64 MiB per TensorCore


def _pick_fc_k_tile(flat_dim, f_dim, per_buffer_bytes):
    """Pick the fc K-tile. Returns (tk, padded_flat_dim)."""
    bytes_per_k = f_dim * 2  # one bf16 row of fc_w
    if flat_dim * bytes_per_k <= per_buffer_bytes:
        return flat_dim, flat_dim                       # single tile fits
    max_tk = max(512, (per_buffer_bytes // bytes_per_k) // 512 * 512)
    best = None
    for tk in range(512, max_tk + 1, 512):              # prefer exact divisor
        if flat_dim % tk == 0:
            best = tk
    if best is not None:
        return best, flat_dim
    padded = _round_up(flat_dim, max_tk)                 # zero-pad along K (exact)
    return max_tk, padded


# ---------------------------------------------------------------------------
# Pallas kernel 1: M-tiled  out = relu(x @ w + b)   (used for the convs)
# ---------------------------------------------------------------------------
def _matmul_bias_relu_kernel(x_ref, w_ref, b_ref, o_ref):
    acc = jnp.dot(x_ref[...], w_ref[...], preferred_element_type=jnp.float32)
    acc = jnp.maximum(acc + b_ref[...].astype(jnp.float32), 0.0)
    o_ref[...] = acc.astype(o_ref.dtype)


def matmul_bias_relu(x, w, b, tm=CONV_M_TILE):
    """x: (M, K) bf16, w: (K, N) bf16, b: (N,) f32 -> (M, N) bf16."""
    M, K = x.shape
    K2, N = w.shape
    assert K == K2, (K, K2)

    tile_m = tm if M >= tm else _round_up(M, 8)
    M_pad = _round_up(M, tile_m)
    if M_pad != M:
        x = jnp.pad(x, ((0, M_pad - M), (0, 0)))

    out = pl.pallas_call(
        _matmul_bias_relu_kernel,
        out_shape=jax.ShapeDtypeStruct((M_pad, N), jnp.bfloat16),
        grid=(M_pad // tile_m,),
        in_specs=[
            pl.BlockSpec((tile_m, K), lambda i: (i, 0)),   # rows stream / pipeline
            pl.BlockSpec((K, N), lambda i: (0, 0)),        # weight resident
            pl.BlockSpec((1, N), lambda i: (0, 0)),
        ],
        out_specs=pl.BlockSpec((tile_m, N), lambda i: (i, 0)),
        compiler_params=pltpu.CompilerParams(dimension_semantics=("parallel",)),
    )(x, w, b.reshape(1, N))
    return out[:M] if M_pad != M else out


# ---------------------------------------------------------------------------
# Pallas kernel 2: fused policy head.
#   grid=(nk,) streams the fc weight K-tiles; accumulator lives in VMEM scratch.
#   On the last K step the rest of the head runs entirely in VMEM:
#     img  = relu(acc + fc_b)
#     h    = relu(img @ p1_w_img + goal @ p1_w_goal + p1_b)   (no concat)
#     h    = relu(h @ p2_w + p2_b)
#     mean = h @ p3_w + p3_b
#     std  = exp(log_std)
# ---------------------------------------------------------------------------
def _policy_head_kernel(flat_ref, fcw_ref, fcb_ref, goal_ref,
                        p1wi_ref, p1wg_ref, p1b_ref,
                        p2w_ref, p2b_ref, p3w_ref, p3b_ref, logstd_ref,
                        mean_ref, std_ref, acc_ref):
    k = pl.program_id(0)

    @pl.when(k == 0)
    def _init():
        acc_ref[...] = jnp.zeros_like(acc_ref)

    acc_ref[...] += jnp.dot(flat_ref[...], fcw_ref[...],
                            preferred_element_type=jnp.float32)

    @pl.when(k == pl.num_programs(0) - 1)
    def _finalize():
        img = jnp.maximum(acc_ref[...] + fcb_ref[...].astype(jnp.float32), 0.0)

        h = jnp.dot(img.astype(jnp.bfloat16), p1wi_ref[...],
                    preferred_element_type=jnp.float32)
        h += jnp.dot(goal_ref[...].astype(jnp.bfloat16), p1wg_ref[...],
                     preferred_element_type=jnp.float32)
        h = jnp.maximum(h + p1b_ref[...].astype(jnp.float32), 0.0)

        h = jnp.dot(h.astype(jnp.bfloat16), p2w_ref[...],
                    preferred_element_type=jnp.float32)
        h = jnp.maximum(h + p2b_ref[...].astype(jnp.float32), 0.0)

        mean = jnp.dot(h.astype(jnp.bfloat16), p3w_ref[...],
                       preferred_element_type=jnp.float32)
        mean = mean + p3b_ref[...].astype(jnp.float32)

        mean_ref[...] = mean.astype(mean_ref.dtype)
        std_ref[...] = jnp.exp(logstd_ref[...]).astype(std_ref.dtype)


def policy_head_pallas(flat, goal, params):
    """flat: (B, FLAT) bf16, goal: (B, G) f32 -> mean (B, A) f32, std (A,) f32."""
    B, FLAT = flat.shape
    F = params["fc_b"].shape[0]
    G = goal.shape[1]
    H1 = params["p1_b"].shape[0]
    H2 = params["p2_b"].shape[0]
    A = params["p3_b"].shape[0]

    per_buf_bytes, vmem_limit = _head_vmem_budget()
    tk, FLAT_pad = _pick_fc_k_tile(FLAT, F, per_buf_bytes)

    fc_w = params["fc_w"]
    if FLAT_pad != FLAT:
        flat = jnp.pad(flat, ((0, 0), (0, FLAT_pad - FLAT)))
        fc_w = jnp.pad(fc_w, ((0, FLAT_pad - FLAT), (0, 0)))
    nk = FLAT_pad // tk

    in_specs = [
        pl.BlockSpec((B, tk), lambda k: (0, k)),      # flat: K-tiled
        pl.BlockSpec((tk, F), lambda k: (k, 0)),      # fc_w: K-tiled (streamed)
        pl.BlockSpec((1, F), lambda k: (0, 0)),       # fc_b
        pl.BlockSpec((B, G), lambda k: (0, 0)),       # goal_vec (no concat)
        pl.BlockSpec((F, H1), lambda k: (0, 0)),      # p1_w_img
        pl.BlockSpec((G, H1), lambda k: (0, 0)),      # p1_w_goal
        pl.BlockSpec((1, H1), lambda k: (0, 0)),      # p1_b
        pl.BlockSpec((H1, H2), lambda k: (0, 0)),     # p2_w
        pl.BlockSpec((1, H2), lambda k: (0, 0)),      # p2_b
        pl.BlockSpec((H2, A), lambda k: (0, 0)),      # p3_w
        pl.BlockSpec((1, A), lambda k: (0, 0)),       # p3_b
        pl.BlockSpec((1, A), lambda k: (0, 0)),       # log_std
    ]
    out_shape = (jax.ShapeDtypeStruct((B, A), jnp.float32),
                 jax.ShapeDtypeStruct((1, A), jnp.float32))
    out_specs = (pl.BlockSpec((B, A), lambda k: (0, 0)),
                 pl.BlockSpec((1, A), lambda k: (0, 0)))

    mean, std = pl.pallas_call(
        _policy_head_kernel,
        out_shape=out_shape,
        grid=(nk,),
        in_specs=in_specs,
        out_specs=out_specs,
        scratch_shapes=[pltpu.VMEM((B, F), jnp.float32)],
        compiler_params=pltpu.CompilerParams(
            dimension_semantics=("arbitrary",),       # K reduction axis
            vmem_limit_bytes=vmem_limit),
    )(flat,
      fc_w, params["fc_b"].reshape(1, F),
      goal,
      params["p1_w_img"], params["p1_w_goal"], params["p1_b"].reshape(1, H1),
      params["p2_w"], params["p2_b"].reshape(1, H2),
      params["p3_w"], params["p3_b"].reshape(1, A),
      params["log_std"].reshape(1, A))
    return mean, std[0]


# ---------------------------------------------------------------------------
# Conv2d via im2col (XLA glue, bf16) + M-tiled Pallas matmul
# ---------------------------------------------------------------------------
def _im2col(x_nhwc, kh, kw, stride, pad):
    x = jnp.pad(x_nhwc, ((0, 0), (pad, pad), (pad, pad), (0, 0)))
    B, Hp, Wp, C = x.shape
    Ho = (Hp - kh) // stride + 1
    Wo = (Wp - kw) // stride + 1
    cols = []
    for i in range(kh):
        for j in range(kw):
            cols.append(x[:, i:i + stride * Ho:stride, j:j + stride * Wo:stride, :])
    patches = jnp.concatenate(cols, axis=-1)              # (B, Ho, Wo, kh*kw*C)
    return patches.reshape(B * Ho * Wo, kh * kw * C), Ho, Wo


def conv2d_relu(x_nhwc, w_mat, b, kh, kw, stride, pad):
    """w_mat: (kh*kw*Cin, Cout) bf16, rows ordered (kh, kw, cin) to match im2col."""
    patches, Ho, Wo = _im2col(x_nhwc, kh, kw, stride, pad)
    out = matmul_bias_relu(patches, w_mat, b)              # Pallas MXU hot path
    B = x_nhwc.shape[0]
    return out.reshape(B, Ho, Wo, w_mat.shape[1])


# ---------------------------------------------------------------------------
# Deterministic parameter initialization (synthetic; matches module shapes)
# Conv/linear weights are stored bf16 (MXU-native), biases & log_std in f32.
# ---------------------------------------------------------------------------
def _conv_out(n, k, s, p):
    return (n + 2 * p - k) // s + 1


def init_params(key):
    W, H = SENSOR_SIZE
    h1, w1 = _conv_out(H, 8, 4, 2), _conv_out(W, 8, 4, 2)
    h2, w2 = _conv_out(h1, 4, 2, 1), _conv_out(w1, 4, 2, 1)
    h3, w3 = _conv_out(h2, 3, 1, 1), _conv_out(w2, 3, 1, 1)
    conv_output_size = 64 * h3 * w3

    ks = jax.random.split(key, 16)

    def w_init(k, shape, fan_in):
        w = jax.random.normal(k, shape, jnp.float32) * (1.0 / jnp.sqrt(fan_in))
        return w.astype(jnp.bfloat16)

    params = {
        # conv weights pre-flattened to (kh*kw*cin, cout) im2col-matmul layout
        "conv1_w": w_init(ks[0], (8 * 8 * INPUT_CHANNELS, 32), INPUT_CHANNELS * 64),
        "conv1_b": jnp.zeros((32,), jnp.float32),
        "conv2_w": w_init(ks[1], (4 * 4 * 32, 64), 32 * 16),
        "conv2_b": jnp.zeros((64,), jnp.float32),
        "conv3_w": w_init(ks[2], (3 * 3 * 64, 64), 64 * 9),
        "conv3_b": jnp.zeros((64,), jnp.float32),
        # linear weights stored as (in, out) ready for x @ w
        "fc_w": w_init(ks[3], (conv_output_size, FEATURE_DIM), conv_output_size),
        "fc_b": jnp.zeros((FEATURE_DIM,), jnp.float32),
        # p1 split into image-feature and goal-vector blocks (replaces concat)
        "p1_w_img": w_init(ks[4], (FEATURE_DIM, P1_DIM), FEATURE_DIM + GOAL_VEC_DIM),
        "p1_w_goal": w_init(ks[5], (GOAL_VEC_DIM, P1_DIM), FEATURE_DIM + GOAL_VEC_DIM),
        "p1_b": jnp.zeros((P1_DIM,), jnp.float32),
        "p2_w": w_init(ks[6], (P1_DIM, P2_DIM), P1_DIM),
        "p2_b": jnp.zeros((P2_DIM,), jnp.float32),
        "p3_w": w_init(ks[7], (P2_DIM, ACTION_DIM), P2_DIM),
        "p3_b": jnp.zeros((ACTION_DIM,), jnp.float32),
        "log_std": jnp.zeros((ACTION_DIM,), jnp.float32),
    }
    return params


# ---------------------------------------------------------------------------
# Forward pass (mirrors PPOPolicy.forward)
# ---------------------------------------------------------------------------
def ppo_policy_forward(params, images_nchw, goal_vec):
    # Cast to bf16 BEFORE the NCHW->NHWC transpose (halves the transpose bytes).
    x = jnp.transpose(images_nchw.astype(jnp.bfloat16), (0, 2, 3, 1))

    # CNNFeatureExtractor.conv_layers (im2col + Pallas matmul+bias+ReLU each)
    x = conv2d_relu(x, params["conv1_w"], params["conv1_b"], 8, 8, stride=4, pad=2)
    x = conv2d_relu(x, params["conv2_w"], params["conv2_b"], 4, 4, stride=2, pad=1)
    x = conv2d_relu(x, params["conv3_w"], params["conv3_b"], 3, 3, stride=1, pad=1)

    # flatten (NHWC order) + fused head: fc/ReLU + p1/ReLU + p2/ReLU + p3 + exp
    B = x.shape[0]
    flat = x.reshape(B, -1)
    mean, std = policy_head_pallas(flat, goal_vec.astype(jnp.float32), params)
    return mean, std


if __name__ == "__main__":
    key = jax.random.PRNGKey(0)
    k_param, k_img, k_goal = jax.random.split(key, 3)

    params = init_params(k_param)

    batch = 2
    W, H = SENSOR_SIZE
    images = jax.random.normal(k_img, (batch, INPUT_CHANNELS, H, W), jnp.float32)
    goal_vec = jax.random.normal(k_goal, (batch, GOAL_VEC_DIM), jnp.float32)

    mean, std = jax.jit(ppo_policy_forward)(params, images, goal_vec)
    jax.block_until_ready((mean, std))

    assert mean.shape == (batch, ACTION_DIM), mean.shape
    assert std.shape == (ACTION_DIM,), std.shape
    assert bool(jnp.all(jnp.isfinite(mean))) and bool(jnp.all(jnp.isfinite(std)))
    print("KERNEL_OK")
</pallas_src>

<mosaic_0001>
module attributes {stable_mosaic.version = 11 : i64} {
  func.func @_matmul_bias_relu_kernel(%arg0: i32, %arg1: memref<128x384xbf16, #tpu.memory_space<vmem>>, %arg2: memref<384x32xbf16, #tpu.memory_space<vmem>>, %arg3: memref<1x32xf32, #tpu.memory_space<vmem>>, %arg4: memref<128x32xbf16, #tpu.memory_space<vmem>>) attributes {dimension_semantics = [#tpu.dimension_semantics<parallel>], iteration_bounds = array<i64: 1>, scalar_prefetch = 0 : i64, scratch_operands = 0 : i64, tpu.core_type = #tpu.core_type<tc>, window_params = [{transform_indices = @transform_0, window_bounds = array<i64: 128, 384>}, {pipeline_mode = #tpu.pipeline_mode<synchronous>, transform_indices = @transform_1, window_bounds = array<i64: 384, 32>}, {pipeline_mode = #tpu.pipeline_mode<synchronous>, transform_indices = @transform_2, window_bounds = array<i64: 1, 32>}, {transform_indices = @transform_3, window_bounds = array<i64: 128, 32>}]} {
    %c0 = arith.constant 0 : index
    %c0_0 = arith.constant 0 : index
    %0 = vector.load %arg1[%c0, %c0_0] : memref<128x384xbf16, #tpu.memory_space<vmem>>, vector<128x384xbf16>
    %c0_1 = arith.constant 0 : index
    %c0_2 = arith.constant 0 : index
    %1 = vector.load %arg2[%c0_1, %c0_2] : memref<384x32xbf16, #tpu.memory_space<vmem>>, vector<384x32xbf16>
    %cst = arith.constant dense<0.000000e+00> : vector<128x32xf32>
    %2 = tpu.matmul %0, %1, %cst {dimension_numbers = #tpu.dot_dimension_numbers<[1], [0], [0], [1], [0, 0, 1, 1], [], []>} : vector<128x384xbf16>, vector<384x32xbf16>, vector<128x32xf32> -> vector<128x32xf32>
    %c0_3 = arith.constant 0 : index
    %c0_4 = arith.constant 0 : index
    %3 = vector.load %arg3[%c0_3, %c0_4] : memref<1x32xf32, #tpu.memory_space<vmem>>, vector<1x32xf32>
    %4 = vector.broadcast %3 : vector<1x32xf32> to vector<128x32xf32>
    %5 = arith.addf %2, %4 : vector<128x32xf32>
    %cst_5 = arith.constant 0.000000e+00 : f32
    %6 = vector.broadcast %cst_5 : f32 to vector<128x32xf32>
    %7 = arith.maximumf %5, %6 : vector<128x32xf32>
    %8 = arith.truncf %7 : vector<128x32xf32> to vector<128x32xbf16>
    %c0_6 = arith.constant 0 : index
    %c0_7 = arith.constant 0 : index
    %9 = vector.load %arg4[%c0_6, %c0_7] : memref<128x32xbf16, #tpu.memory_space<vmem>>, vector<128x32xbf16>
    tpu.vector_store %arg4[%c0_6, %c0_7], %8 {strides = array<i32>} : memref<128x32xbf16, #tpu.memory_space<vmem>>, vector<128x32xbf16>,
    return
  }
  func.func @transform_0(%arg0: i32) -> (i32, i32) {
    %c0_i32 = arith.constant 0 : i32
    %c0_i32_0 = arith.constant 0 : i32
    return %arg0, %c0_i32 : i32, i32
  }
  func.func @transform_1(%arg0: i32) -> (i32, i32) {
    %c0_i32 = arith.constant 0 : i32
    %c0_i32_0 = arith.constant 0 : i32
    %c0_i32_1 = arith.constant 0 : i32
    return %c0_i32, %c0_i32_0 : i32, i32
  }
  func.func @transform_2(%arg0: i32) -> (i32, i32) {
    %c0_i32 = arith.constant 0 : i32
    %c0_i32_0 = arith.constant 0 : i32
    %c0_i32_1 = arith.constant 0 : i32
    return %c0_i32, %c0_i32_0 : i32, i32
  }
  func.func @transform_3(%arg0: i32) -> (i32, i32) {
    %c0_i32 = arith.constant 0 : i32
    %c0_i32_0 = arith.constant 0 : i32
    return %arg0, %c0_i32 : i32, i32
  }
}

module attributes {stable_mosaic.version = 11 : i64} {
  func.func @_matmul_bias_relu_kernel(%arg0: i32, %arg1: memref<32x512xbf16, #tpu.memory_space<vmem>>, %arg2: memref<512x64xbf16, #tpu.memory_space<vmem>>, %arg3: memref<1x64xf32, #tpu.memory_space<vmem>>, %arg4: memref<32x64xbf16, #tpu.memory_space<vmem>>) attributes {dimension_semantics = [#tpu.dimension_semantics<parallel>], iteration_bounds = array<i64: 1>, scalar_prefetch = 0 : i64, scratch_operands = 0 : i64, tpu.core_type = #tpu.core_type<tc>, window_params = [{transform_indices = @transform_0, window_bounds = array<i64: 32, 512>}, {pipeline_mode = #tpu.pipeline_mode<synchronous>, transform_indices = @transform_1, window_bounds = array<i64: 512, 64>}, {pipeline_mode = #tpu.pipeline_mode<synchronous>, transform_indices = @transform_2, window_bounds = array<i64: 1, 64>}, {transform_indices = @transform_3, window_bounds = array<i64: 32, 64>}]} {
    %c0 = arith.constant 0 : index
    %c0_0 = arith.constant 0 : index
    %0 = vector.load %arg1[%c0, %c0_0] : memref<32x512xbf16, #tpu.memory_space<vmem>>, vector<32x512xbf16>
    %c0_1 = arith.constant 0 : index
    %c0_2 = arith.constant 0 : index
    %1 = vector.load %arg2[%c0_1, %c0_2] : memref<512x64xbf16, #tpu.memory_space<vmem>>, vector<512x64xbf16>
    %cst = arith.constant dense<0.000000e+00> : vector<32x64xf32>
    %2 = tpu.matmul %0, %1, %cst {dimension_numbers = #tpu.dot_dimension_numbers<[1], [0], [0], [1], [0, 0, 1, 1], [], []>} : vector<32x512xbf16>, vector<512x64xbf16>, vector<32x64xf32> -> vector<32x64xf32>
    %c0_3 = arith.constant 0 : index
    %c0_4 = arith.constant 0 : index
    %3 = vector.load %arg3[%c0_3, %c0_4] : memref<1x64xf32, #tpu.memory_space<vmem>>, vector<1x64xf32>
    %4 = vector.broadcast %3 : vector<1x64xf32> to vector<32x64xf32>
    %5 = arith.addf %2, %4 : vector<32x64xf32>
    %cst_5 = arith.constant 0.000000e+00 : f32
    %6 = vector.broadcast %cst_5 : f32 to vector<32x64xf32>
    %7 = arith.maximumf %5, %6 : vector<32x64xf32>
    %8 = arith.truncf %7 : vector<32x64xf32> to vector<32x64xbf16>
    %c0_6 = arith.constant 0 : index
    %c0_7 = arith.constant 0 : index
    %9 = vector.load %arg4[%c0_6, %c0_7] : memref<32x64xbf16, #tpu.memory_space<vmem>>, vector<32x64xbf16>
    tpu.vector_store %arg4[%c0_6, %c0_7], %8 {strides = array<i32>} : memref<32x64xbf16, #tpu.memory_space<vmem>>, vector<32x64xbf16>,
    return
  }
  func.func @transform_0(%arg0: i32) -> (i32, i32) {
    %c0_i32 = arith.constant 0 : i32
    %c0_i32_0 = arith.constant 0 : i32
    return %arg0, %c0_i32 : i32, i32
  }
  func.func @transform_1(%arg0: i32) -> (i32, i32) {
    %c0_i32 = arith.constant 0 : i32
    %c0_i32_0 = arith.constant 0 : i32
    %c0_i32_1 = arith.constant 0 : i32
    return %c0_i32, %c0_i32_0 : i32, i32
  }
  func.func @transform_2(%arg0: i32) -> (i32, i32) {
    %c0_i32 = arith.constant 0 : i32
    %c0_i32_0 = arith.constant 0 : i32
    %c0_i32_1 = arith.constant 0 : i32
    return %c0_i32, %c0_i32_0 : i32, i32
  }
  func.func @transform_3(%arg0: i32) -> (i32, i32) {
    %c0_i32 = arith.constant 0 : i32
    %c0_i32_0 = arith.constant 0 : i32
    return %arg0, %c0_i32 : i32, i32
  }
}

module attributes {stable_mosaic.version = 11 : i64} {
  func.func @_matmul_bias_relu_kernel(%arg0: i32, %arg1: memref<32x576xbf16, #tpu.memory_space<vmem>>, %arg2: memref<576x64xbf16, #tpu.memory_space<vmem>>, %arg3: memref<1x64xf32, #tpu.memory_space<vmem>>, %arg4: memref<32x64xbf16, #tpu.memory_space<vmem>>) attributes {dimension_semantics = [#tpu.dimension_semantics<parallel>], iteration_bounds = array<i64: 1>, scalar_prefetch = 0 : i64, scratch_operands = 0 : i64, tpu.core_type = #tpu.core_type<tc>, window_params = [{transform_indices = @transform_0, window_bounds = array<i64: 32, 576>}, {pipeline_mode = #tpu.pipeline_mode<synchronous>, transform_indices = @transform_1, window_bounds = array<i64: 576, 64>}, {pipeline_mode = #tpu.pipeline_mode<synchronous>, transform_indices = @transform_2, window_bounds = array<i64: 1, 64>}, {transform_indices = @transform_3, window_bounds = array<i64: 32, 64>}]} {
    %c0 = arith.constant 0 : index
    %c0_0 = arith.constant 0 : index
    %0 = vector.load %arg1[%c0, %c0_0] : memref<32x576xbf16, #tpu.memory_space<vmem>>, vector<32x576xbf16>
    %c0_1 = arith.constant 0 : index
    %c0_2 = arith.constant 0 : index
    %1 = vector.load %arg2[%c0_1, %c0_2] : memref<576x64xbf16, #tpu.memory_space<vmem>>, vector<576x64xbf16>
    %cst = arith.constant dense<0.000000e+00> : vector<32x64xf32>
    %2 = tpu.matmul %0, %1, %cst {dimension_numbers = #tpu.dot_dimension_numbers<[1], [0], [0], [1], [0, 0, 1, 1], [], []>} : vector<32x576xbf16>, vector<576x64xbf16>, vector<32x64xf32> -> vector<32x64xf32>
    %c0_3 = arith.constant 0 : index
    %c0_4 = arith.constant 0 : index
    %3 = vector.load %arg3[%c0_3, %c0_4] : memref<1x64xf32, #tpu.memory_space<vmem>>, vector<1x64xf32>
    %4 = vector.broadcast %3 : vector<1x64xf32> to vector<32x64xf32>
    %5 = arith.addf %2, %4 : vector<32x64xf32>
    %cst_5 = arith.constant 0.000000e+00 : f32
    %6 = vector.broadcast %cst_5 : f32 to vector<32x64xf32>
    %7 = arith.maximumf %5, %6 : vector<32x64xf32>
    %8 = arith.truncf %7 : vector<32x64xf32> to vector<32x64xbf16>
    %c0_6 = arith.constant 0 : index
    %c0_7 = arith.constant 0 : index
    %9 = vector.load %arg4[%c0_6, %c0_7] : memref<32x64xbf16, #tpu.memory_space<vmem>>, vector<32x64xbf16>
    tpu.vector_store %arg4[%c0_6, %c0_7], %8 {strides = array<i32>} : memref<32x64xbf16, #tpu.memory_space<vmem>>, vector<32x64xbf16>,
    return
  }
  func.func @transform_0(%arg0: i32) -> (i32, i32) {
    %c0_i32 = arith.constant 0 : i32
    %c0_i32_0 = arith.constant 0 : i32
    return %arg0, %c0_i32 : i32, i32
  }
  func.func @transform_1(%arg0: i32) -> (i32, i32) {
    %c0_i32 = arith.constant 0 : i32
    %c0_i32_0 = arith.constant 0 : i32
    %c0_i32_1 = arith.constant 0 : i32
    return %c0_i32, %c0_i32_0 : i32, i32
  }
  func.func @transform_2(%arg0: i32) -> (i32, i32) {
    %c0_i32 = arith.constant 0 : i32
    %c0_i32_0 = arith.constant 0 : i32
    %c0_i32_1 = arith.constant 0 : i32
    return %c0_i32, %c0_i32_0 : i32, i32
  }
  func.func @transform_3(%arg0: i32) -> (i32, i32) {
    %c0_i32 = arith.constant 0 : i32
    %c0_i32_0 = arith.constant 0 : i32
    return %arg0, %c0_i32 : i32, i32
  }
}

module attributes {stable_mosaic.version = 11 : i64} {
  func.func @_policy_head_kernel(%arg0: i32, %arg1: memref<2x1024xbf16, #tpu.memory_space<vmem>>, %arg2: memref<1024x128xbf16, #tpu.memory_space<vmem>>, %arg3: memref<1x128xf32, #tpu.memory_space<vmem>>, %arg4: memref<2x2xf32, #tpu.memory_space<vmem>>, %arg5: memref<128x256xbf16, #tpu.memory_space<vmem>>, %arg6: memref<2x256xbf16, #tpu.memory_space<vmem>>, %arg7: memref<1x256xf32, #tpu.memory_space<vmem>>, %arg8: memref<256x128xbf16, #tpu.memory_space<vmem>>, %arg9: memref<1x128xf32, #tpu.memory_space<vmem>>, %arg10: memref<128x2xbf16, #tpu.memory_space<vmem>>, %arg11: memref<1x2xf32, #tpu.memory_space<vmem>>, %arg12: memref<1x2xf32, #tpu.memory_space<vmem>>, %arg13: memref<2x2xf32, #tpu.memory_space<vmem>>, %arg14: memref<1x2xf32, #tpu.memory_space<vmem>>, %arg15: memref<2x128xf32, #tpu.memory_space<vmem>>) attributes {dimension_semantics = [#tpu.dimension_semantics<arbitrary>], iteration_bounds = array<i64: 1>, scalar_prefetch = 0 : i64, scratch_operands = 1 : i64, tpu.core_type = #tpu.core_type<tc>, window_params = [{transform_indices = @transform_0, window_bounds = array<i64: 2, 1024>}, {transform_indices = @transform_1, window_bounds = array<i64: 1024, 128>}, {pipeline_mode = #tpu.pipeline_mode<synchronous>, transform_indices = @transform_2, window_bounds = array<i64: 1, 128>}, {pipeline_mode = #tpu.pipeline_mode<synchronous>, transform_indices = @transform_3, window_bounds = array<i64: 2, 2>}, {pipeline_mode = #tpu.pipeline_mode<synchronous>, transform_indices = @transform_4, window_bounds = array<i64: 128, 256>}, {pipeline_mode = #tpu.pipeline_mode<synchronous>, transform_indices = @transform_5, window_bounds = array<i64: 2, 256>}, {pipeline_mode = #tpu.pipeline_mode<synchronous>, transform_indices = @transform_6, window_bounds = array<i64: 1, 256>}, {pipeline_mode = #tpu.pipeline_mode<synchronous>, transform_indices = @transform_7, window_bounds = array<i64: 256, 128>}, {pipeline_mode = #tpu.pipeline_mode<synchronous>, transform_indices = @transform_8, window_bounds = array<i64: 1, 128>}, {pipeline_mode = #tpu.pipeline_mode<synchronous>, transform_indices = @transform_9, window_bounds = array<i64: 128, 2>}, {pipeline_mode = #tpu.pipeline_mode<synchronous>, transform_indices = @transform_10, window_bounds = array<i64: 1, 2>}, {pipeline_mode = #tpu.pipeline_mode<synchronous>, transform_indices = @transform_11, window_bounds = array<i64: 1, 2>}, {pipeline_mode = #tpu.pipeline_mode<synchronous>, transform_indices = @transform_12, window_bounds = array<i64: 2, 2>}, {pipeline_mode = #tpu.pipeline_mode<synchronous>, transform_indices = @transform_13, window_bounds = array<i64: 1, 2>}]} {
    %c0_i32 = arith.constant 0 : i32
    %0 = arith.cmpi eq, %arg0, %c0_i32 : i32
    %1 = arith.extui %0 : i1 to i32
    %c0_i32_0 = arith.constant 0 : i32
    %2 = arith.cmpi ne, %1, %c0_i32_0 : i32
    scf.if %2 {
      %cst_10 = arith.constant 0.000000e+00 : f32
      %12 = vector.broadcast %cst_10 : f32 to vector<2x128xf32>
      %c0_11 = arith.constant 0 : index
      %c0_12 = arith.constant 0 : index
      %13 = vector.load %arg15[%c0_11, %c0_12] : memref<2x128xf32, #tpu.memory_space<vmem>>, vector<2x128xf32>
      tpu.vector_store %arg15[%c0_11, %c0_12], %12 {strides = array<i32>} : memref<2x128xf32, #tpu.memory_space<vmem>>, vector<2x128xf32>,
    } else {
    }
    %c0 = arith.constant 0 : index
    %c0_1 = arith.constant 0 : index
    %3 = vector.load %arg15[%c0, %c0_1] : memref<2x128xf32, #tpu.memory_space<vmem>>, vector<2x128xf32>
    %c0_2 = arith.constant 0 : index
    %c0_3 = arith.constant 0 : index
    %4 = vector.load %arg1[%c0_2, %c0_3] : memref<2x1024xbf16, #tpu.memory_space<vmem>>, vector<2x1024xbf16>
    %c0_4 = arith.constant 0 : index
    %c0_5 = arith.constant 0 : index
    %5 = vector.load %arg2[%c0_4, %c0_5] : memref<1024x128xbf16, #tpu.memory_space<vmem>>, vector<1024x128xbf16>
    %cst = arith.constant dense<0.000000e+00> : vector<2x128xf32>
    %6 = tpu.matmul %4, %5, %cst {dimension_numbers = #tpu.dot_dimension_numbers<[1], [0], [0], [1], [0, 0, 1, 1], [], []>} : vector<2x1024xbf16>, vector<1024x128xbf16>, vector<2x128xf32> -> vector<2x128xf32>
    %7 = arith.addf %3, %6 : vector<2x128xf32>
    %c0_6 = arith.constant 0 : index
    %c0_7 = arith.constant 0 : index
    %8 = vector.load %arg15[%c0_6, %c0_7] : memref<2x128xf32, #tpu.memory_space<vmem>>, vector<2x128xf32>
    tpu.vector_store %arg15[%c0_6, %c0_7], %7 {strides = array<i32>} : memref<2x128xf32, #tpu.memory_space<vmem>>, vector<2x128xf32>,
    %c0_i32_8 = arith.constant 0 : i32
    %9 = arith.cmpi eq, %arg0, %c0_i32_8 : i32
    %10 = arith.extui %9 : i1 to i32
    %c0_i32_9 = arith.constant 0 : i32
    %11 = arith.cmpi ne, %10, %c0_i32_9 : i32
    scf.if %11 {
      %c0_10 = arith.constant 0 : index
      %c0_11 = arith.constant 0 : index
      %12 = vector.load %arg15[%c0_10, %c0_11] : memref<2x128xf32, #tpu.memory_space<vmem>>, vector<2x128xf32>
      %c0_12 = arith.constant 0 : index
      %c0_13 = arith.constant 0 : index
      %13 = vector.load %arg3[%c0_12, %c0_13] : memref<1x128xf32, #tpu.memory_space<vmem>>, vector<1x128xf32>
      %14 = vector.broadcast %13 : vector<1x128xf32> to vector<2x128xf32>
      %15 = arith.addf %12, %14 : vector<2x128xf32>
      %cst_14 = arith.constant 0.000000e+00 : f32
      %16 = vector.broadcast %cst_14 : f32 to vector<2x128xf32>
      %17 = arith.maximumf %15, %16 : vector<2x128xf32>
      %18 = arith.truncf %17 : vector<2x128xf32> to vector<2x128xbf16>
      %c0_15 = arith.constant 0 : index
      %c0_16 = arith.constant 0 : index
      %19 = vector.load %arg5[%c0_15, %c0_16] : memref<128x256xbf16, #tpu.memory_space<vmem>>, vector<128x256xbf16>
      %cst_17 = arith.constant dense<0.000000e+00> : vector<2x256xf32>
      %20 = tpu.matmul %18, %19, %cst_17 {dimension_numbers = #tpu.dot_dimension_numbers<[1], [0], [0], [1], [0, 0, 1, 1], [], []>} : vector<2x128xbf16>, vector<128x256xbf16>, vector<2x256xf32> -> vector<2x256xf32>
      %c0_18 = arith.constant 0 : index
      %c0_19 = arith.constant 0 : index
      %21 = vector.load %arg4[%c0_18, %c0_19] : memref<2x2xf32, #tpu.memory_space<vmem>>, vector<2x2xf32>
      %22 = arith.truncf %21 : vector<2x2xf32> to vector<2x2xbf16>
      %c0_20 = arith.constant 0 : index
      %c0_21 = arith.constant 0 : index
      %23 = vector.load %arg6[%c0_20, %c0_21] : memref<2x256xbf16, #tpu.memory_space<vmem>>, vector<2x256xbf16>
      %cst_22 = arith.constant dense<0.000000e+00> : vector<2x256xf32>
      %24 = tpu.matmul %22, %23, %cst_22 {dimension_numbers = #tpu.dot_dimension_numbers<[1], [0], [0], [1], [0, 0, 1, 1], [], []>} : vector<2x2xbf16>, vector<2x256xbf16>, vector<2x256xf32> -> vector<2x256xf32>
      %25 = arith.addf %20, %24 : vector<2x256xf32>
      %c0_23 = arith.constant 0 : index
      %c0_24 = arith.constant 0 : index
      %26 = vector.load %arg7[%c0_23, %c0_24] : memref<1x256xf32, #tpu.memory_space<vmem>>, vector<1x256xf32>
      %27 = vector.broadcast %26 : vector<1x256xf32> to vector<2x256xf32>
      %28 = arith.addf %25, %27 : vector<2x256xf32>
      %cst_25 = arith.constant 0.000000e+00 : f32
      %29 = vector.broadcast %cst_25 : f32 to vector<2x256xf32>
      %30 = arith.maximumf %28, %29 : vector<2x256xf32>
      %31 = arith.truncf %30 : vector<2x256xf32> to vector<2x256xbf16>
      %c0_26 = arith.constant 0 : index
      %c0_27 = arith.constant 0 : index
      %32 = vector.load %arg8[%c0_26, %c0_27] : memref<256x128xbf16, #tpu.memory_space<vmem>>, vector<256x128xbf16>
      %cst_28 = arith.constant dense<0.000000e+00> : vector<2x128xf32>
      %33 = tpu.matmul %31, %32, %cst_28 {dimension_numbers = #tpu.dot_dimension_numbers<[1], [0], [0], [1], [0, 0, 1, 1], [], []>} : vector<2x256xbf16>, vector<256x128xbf16>, vector<2x128xf32> -> vector<2x128xf32>
      %c0_29 = arith.constant 0 : index
      %c0_30 = arith.constant 0 : index
      %34 = vector.load %arg9[%c0_29, %c0_30] : memref<1x128xf32, #tpu.memory_space<vmem>>, vector<1x128xf32>
      %35 = vector.broadcast %34 : vector<1x128xf32> to vector<2x128xf32>
      %36 = arith.addf %33, %35 : vector<2x128xf32>
      %cst_31 = arith.constant 0.000000e+00 : f32
      %37 = vector.broadcast %cst_31 : f32 to vector<2x128xf32>
      %38 = arith.maximumf %36, %37 : vector<2x128xf32>
      %39 = arith.truncf %38 : vector<2x128xf32> to vector<2x128xbf16>
      %c0_32 = arith.constant 0 : index
      %c0_33 = arith.constant 0 : index
      %40 = vector.load %arg10[%c0_32, %c0_33] : memref<128x2xbf16, #tpu.memory_space<vmem>>, vector<128x2xbf16>
      %cst_34 = arith.constant dense<0.000000e+00> : vector<2x2xf32>
      %41 = tpu.matmul %39, %40, %cst_34 {dimension_numbers = #tpu.dot_dimension_numbers<[1], [0], [0], [1], [0, 0, 1, 1], [], []>} : vector<2x128xbf16>, vector<128x2xbf16>, vector<2x2xf32> -> vector<2x2xf32>
      %c0_35 = arith.constant 0 : index
      %c0_36 = arith.constant 0 : index
      %42 = vector.load %arg11[%c0_35, %c0_36] : memref<1x2xf32, #tpu.memory_space<vmem>>, vector<1x2xf32>
      %43 = vector.broadcast %42 : vector<1x2xf32> to vector<2x2xf32>
      %44 = arith.addf %41, %43 : vector<2x2xf32>
      %c0_37 = arith.constant 0 : index
      %c0_38 = arith.constant 0 : index
      %45 = vector.load %arg13[%c0_37, %c0_38] : memref<2x2xf32, #tpu.memory_space<vmem>>, vector<2x2xf32>
      tpu.vector_store %arg13[%c0_37, %c0_38], %44 {strides = array<i32>} : memref<2x2xf32, #tpu.memory_space<vmem>>, vector<2x2xf32>,
      %c0_39 = arith.constant 0 : index
      %c0_40 = arith.constant 0 : index
      %46 = vector.load %arg12[%c0_39, %c0_40] : memref<1x2xf32, #tpu.memory_space<vmem>>, vector<1x2xf32>
      %47 = math.exp %46 : vector<1x2xf32>
      %c0_41 = arith.constant 0 : index
      %c0_42 = arith.constant 0 : index
      %48 = vector.load %arg14[%c0_41, %c0_42] : memref<1x2xf32, #tpu.memory_space<vmem>>, vector<1x2xf32>
      tpu.vector_store %arg14[%c0_41, %c0_42], %47 {strides = array<i32>} : memref<1x2xf32, #tpu.memory_space<vmem>>, vector<1x2xf32>,
    } else {
    }
    return
  }
  func.func @transform_0(%arg0: i32) -> (i32, i32) {
    %c0_i32 = arith.constant 0 : i32
    %c0_i32_0 = arith.constant 0 : i32
    return %c0_i32, %arg0 : i32, i32
  }
  func.func @transform_1(%arg0: i32) -> (i32, i32) {
    %c0_i32 = arith.constant 0 : i32
    %c0_i32_0 = arith.constant 0 : i32
    return %arg0, %c0_i32 : i32, i32
  }
  func.func @transform_2(%arg0: i32) -> (i32, i32) {
    %c0_i32 = arith.constant 0 : i32
    %c0_i32_0 = arith.constant 0 : i32
    %c0_i32_1 = arith.constant 0 : i32
    return %c0_i32, %c0_i32_0 : i32, i32
  }
  func.func @transform_3(%arg0: i32) -> (i32, i32) {
    %c0_i32 = arith.constant 0 : i32
    %c0_i32_0 = arith.constant 0 : i32
    %c0_i32_1 = arith.constant 0 : i32
    return %c0_i32, %c0_i32_0 : i32, i32
  }
  func.func @transform_4(%arg0: i32) -> (i32, i32) {
    %c0_i32 = arith.constant 0 : i32
    %c0_i32_0 = arith.constant 0 : i32
    %c0_i32_1 = arith.constant 0 : i32
    return %c0_i32, %c0_i32_0 : i32, i32
  }
  func.func @transform_5(%arg0: i32) -> (i32, i32) {
    %c0_i32 = arith.constant 0 : i32
    %c0_i32_0 = arith.constant 0 : i32
    %c0_i32_1 = arith.constant 0 : i32
    return %c0_i32, %c0_i32_0 : i32, i32
  }
  func.func @transform_6(%arg0: i32) -> (i32, i32) {
    %c0_i32 = arith.constant 0 : i32
    %c0_i32_0 = arith.constant 0 : i32
    %c0_i32_1 = arith.constant 0 : i32
    return %c0_i32, %c0_i32_0 : i32, i32
  }
  func.func @transform_7(%arg0: i32) -> (i32, i32) {
    %c0_i32 = arith.constant 0 : i32
    %c0_i32_0 = arith.constant 0 : i32
    %c0_i32_1 = arith.constant 0 : i32
    return %c0_i32, %c0_i32_0 : i32, i32
  }
  func.func @transform_8(%arg0: i32) -> (i32, i32) {
    %c0_i32 = arith.constant 0 : i32
    %c0_i32_0 = arith.constant 0 : i32
    %c0_i32_1 = arith.constant 0 : i32
    return %c0_i32, %c0_i32_0 : i32, i32
  }
  func.func @transform_9(%arg0: i32) -> (i32, i32) {
    %c0_i32 = arith.constant 0 : i32
    %c0_i32_0 = arith.constant 0 : i32
    %c0_i32_1 = arith.constant 0 : i32
    return %c0_i32, %c0_i32_0 : i32, i32
  }
  func.func @transform_10(%arg0: i32) -> (i32, i32) {
    %c0_i32 = arith.constant 0 : i32
    %c0_i32_0 = arith.constant 0 : i32
    %c0_i32_1 = arith.constant 0 : i32
    return %c0_i32, %c0_i32_0 : i32, i32
  }
  func.func @transform_11(%arg0: i32) -> (i32, i32) {
    %c0_i32 = arith.constant 0 : i32
    %c0_i32_0 = arith.constant 0 : i32
    %c0_i32_1 = arith.constant 0 : i32
    return %c0_i32, %c0_i32_0 : i32, i32
  }
  func.func @transform_12(%arg0: i32) -> (i32, i32) {
    %c0_i32 = arith.constant 0 : i32
    %c0_i32_0 = arith.constant 0 : i32
    %c0_i32_1 = arith.constant 0 : i32
    return %c0_i32, %c0_i32_0 : i32, i32
  }
  func.func @transform_13(%arg0: i32) -> (i32, i32) {
    %c0_i32 = arith.constant 0 : i32
    %c0_i32_0 = arith.constant 0 : i32
    %c0_i32_1 = arith.constant 0 : i32
    return %c0_i32, %c0_i32_0 : i32, i32
  }
}

</mosaic_0001>

<bundles_post_ra>
// kernel: ppo_policy_forward.4
= control target key start
LH: loop header
LB: loop body
LE: loop exit
PB: predicated region body
PF: predicated region fallthrough
CT: control target
= control target key end

     0   :  { %vm648_vm0 = vcmask 257024   ;;  %s1173_s1 = inlined_call_operand.vmem [shape: bf16[384,32], index: 1, kind: input, shape index: {}]   ;;  %s1174_s0 = inlined_call_operand.vmem [shape: bf16[128,384], index: 0, kind: input, shape index: {}]   ;;  %s1175_s2 = inlined_call_operand.vmem [shape: f32[1,32], index: 2, kind: input, shape index: {}]   ;;  %s1176_s3 = inlined_call_operand.vmem [shape: bf16[128,32], index: 3, kind: output, shape index: {}]  }
   0x1   :  { %v862_v0 = vld [vmem:[%s1173_s1 + $0x40] sm:$0xff]   ;;  %v864_v2 = vld [vmem:[%s1173_s1 + $0x48] sm:$0xff]   ;;  %v867_v5 = vld [vmem:[%s1173_s1 + $0x50] sm:$0xff]  }
   0x2   :  { %v863_v1 = vld [vmem:[%s1173_s1] sm:$0xff]   ;;  %750 = vmatprep.subr.bf16.mxu0 %v862_v0  ;;  %v866_v4 = vld [vmem:[%s1173_s1 + $0x8] sm:$0xff]   ;;  %v869_v7 = vld [vmem:[%s1173_s1 + $0x10] sm:$0xff]  }
   0x3   :  { %751 = vmatpush3.bf16.msra.mxu0 %v863_v1  ;;  %v865_v3 = vld [vmem:[%s1173_s1 + $0x80] sm:$0xff]   ;;  %v868_v6 = vld [vmem:[%s1173_s1 + $0x88] sm:$0xff]   ;;  %v870_v8 = vld [vmem:[%s1173_s1 + $0x58] sm:$0xff]  }
   0x4   :  { %752 = vmatprep.subr.bf16.mxu0 %v864_v2  ;;  %830 = vmatprep.subr.bf16.mxu1 %v865_v3  ;;  %v871_v9 = vld [vmem:[%s1173_s1 + $0x90] sm:$0xff]   ;;  %v872_v10 = vld [vmem:[%s1173_s1 + $0x18] sm:$0xff]   ;;  %v873_v11 = vld [vmem:[%s1173_s1 + $0x60] sm:$0xff]  }
   0x5   :  { %831 = vmatpush3.bf16.msra.mxu1 %v865_v3  ;;  %v874_v12 = vld [vmem:[%s1173_s1 + $0x98] sm:$0xff]   ;;  %v875_v13 = vld [vmem:[%s1173_s1 + $0x20] sm:$0xff]   ;;  %v876_v15 = vld [vmem:[%s1173_s1 + $0x68] sm:$0xff]  }
   0x6   :  { %832 = vmatprep.subr.bf16.mxu1 %v868_v6  ;;  %v877_v14 = vld [vmem:[%s1173_s1 + $0xa0] sm:$0xff]   ;;  %v878_v16 = vld [vmem:[%s1173_s1 + $0x28] sm:$0xff]   ;;  %v879_v18 = vld [vmem:[%s1173_s1 + $0x70] sm:$0xff]  }
   0x7   :  { %753 = vmatpush3.bf16.msra.mxu0 %v866_v4  ;;  %v880_v17 = vld [vmem:[%s1173_s1 + $0xa8] sm:$0xff]   ;;  %v881_v19 = vld [vmem:[%s1173_s1 + $0x30] sm:$0xff]   ;;  %v882_v20 = vld [vmem:[%s1173_s1 + $0x78] sm:$0xff]  }
   0x8   :  { %754 = vmatprep.subr.bf16.mxu0 %v867_v5  ;;  %v883_v21 = vld [vmem:[%s1173_s1 + $0xb0] sm:$0xff]   ;;  %v884_v23 = vld [vmem:[%s1173_s1 + $0x38] sm:$0xff]   ;;  %v885_v26 = vld [vmem:[%s1174_s0] ss:$12 sps:$4 sm:$0xff]  }
   0x9   :  { %833 = vmatpush3.bf16.msra.mxu1 %v868_v6  ;;  %v887_v22 = vld [vmem:[%s1174_s0 + $0x4] ss:$12 sps:$4 sm:$0xff]   ;;  %v889_v24 = vld [vmem:[%s1174_s0 + $0x8] ss:$12 sps:$4 sm:$0xff]   ;;  %v888_v25 = vld [vmem:[%s1173_s1 + $0xb8] sm:$0xff]  }
   0xa   :  { %834 = vmatprep.subr.bf16.mxu1 %v871_v9  ;;  %406 = vmatprep.mubr.bf16.mxu0 %v887_v22  ;;  %v891_v27 = vld [vmem:[%s1174_s0 + $0x1c] ss:$12 sps:$4 sm:$0xff]   ;;  %v890_v28 = vld [vmem:[%s1174_s0 + $0x20] ss:$12 sps:$4 sm:$0xff]   ;;  %v897_v29 = vld [vmem:[%s1174_s0 + $0x38] ss:$12 sps:$4 sm:$0xff]  }
   0xb   :  { %755 = vmatpush3.bf16.msra.mxu0 %v869_v7  ;;  %846 = vmatprep.mubr.bf16.mxu1 %v889_v24  ;;  %v893_v30 = vld [vmem:[%s1174_s0 + $0x18] ss:$12 sps:$4 sm:$0xff]   ;;  %v894_v31 = vld [vmem:[%s1174_s0 + $0x34] ss:$12 sps:$4 sm:$0xff]   ;;  %v898_v32 = vld [vmem:[%s1174_s0 + $0x50] ss:$12 sps:$4 sm:$0xff]  }
   0xc   :  { %756 = vmatprep.subr.bf16.mxu0 %v870_v8  ;;  %v905_v33 = vld [vmem:[%s1174_s0 + $0x68] ss:$12 sps:$4 sm:$0xff]   ;;  %v896_v34 = vld [vmem:[%s1174_s0 + $0x30] ss:$12 sps:$4 sm:$0xff]   ;;  %v899_v35 = vld [vmem:[%s1174_s0 + $0x4c] ss:$12 sps:$4 sm:$0xff]  }
   0xd   :  { %835 = vmatpush3.bf16.msra.mxu1 %v871_v9  ;;  %v906_v36 = vld [vmem:[%s1174_s0 + $0x80] ss:$12 sps:$4 sm:$0xff]   ;;  %v913_v37 = vld [vmem:[%s1174_s0 + $0x98] ss:$12 sps:$4 sm:$0xff]   ;;  %v901_v38 = vld [vmem:[%s1174_s0 + $0x48] ss:$12 sps:$4 sm:$0xff]  }
   0xe   :  { %836 = vmatprep.subr.bf16.mxu1 %v874_v12  ;;  %v902_v39 = vld [vmem:[%s1174_s0 + $0x64] ss:$12 sps:$4 sm:$0xff]   ;;  %v904_v41 = vld [vmem:[%s1174_s0 + $0x60] ss:$12 sps:$4 sm:$0xff]   ;;  %v907_v42 = vld [vmem:[%s1174_s0 + $0x7c] ss:$12 sps:$4 sm:$0xff]  }
   0xf   :  { %757 = vmatpush3.bf16.msra.mxu0 %v872_v10  ;;  %v914_v40 = vld [vmem:[%s1174_s0 + $0xb0] ss:$12 sps:$4 sm:$0xff]   ;;  %v909_v43 = vld [vmem:[%s1174_s0 + $0x78] ss:$12 sps:$4 sm:$0xff]   ;;  %v910_v44 = vld [vmem:[%s1174_s0 + $0x94] ss:$12 sps:$4 sm:$0xff]  }
  0x10   :  { %758 = vmatprep.subr.bf16.mxu0 %v873_v11  ;;  %v912_v45 = vld [vmem:[%s1174_s0 + $0x90] ss:$12 sps:$4 sm:$0xff]   ;;  %v915_v46 = vld [vmem:[%s1174_s0 + $0xac] ss:$12 sps:$4 sm:$0xff]   ;;  %v917_v47 = vld [vmem:[%s1174_s0 + $0xa8] ss:$12 sps:$4 sm:$0xff]  }
  0x11   :  { %837 = vmatpush3.bf16.msra.mxu1 %v874_v12  ;;  %v1085_v50 = vld [vmem:[%s1175_s2] ss:$0 sm:$0xff] }
  0x12   :  { %838 = vmatprep.subr.bf16.mxu1 %v877_v14 }
  0x13   :  { %759 = vmatpush3.bf16.msra.mxu0 %v875_v13 }
  0x14   :  { %760 = vmatprep.subr.bf16.mxu0 %v876_v15 }
  0x15   :  { %839 = vmatpush3.bf16.msra.mxu1 %v877_v14 }
  0x16   :  { %840 = vmatprep.subr.bf16.mxu1 %v880_v17 }
  0x17   :  { %761 = vmatpush3.bf16.msra.mxu0 %v878_v16 }
  0x18   :  { %762 = vmatprep.subr.bf16.mxu0 %v879_v18 }
  0x19   :  { %841 = vmatpush3.bf16.msra.mxu1 %v880_v17 }
  0x1a   :  { %842 = vmatprep.subr.bf16.mxu1 %v883_v21 }
  0x1b   :  { %763 = vmatpush3.bf16.msra.mxu0 %v881_v19 }
  0x1c   :  { %764 = vmatprep.subr.bf16.mxu0 %v882_v20 }
  0x1d   :  { %843 = vmatpush3.bf16.msra.mxu1 %v883_v21 }
  0x1e   :  { %844 = vmatprep.subr.bf16.mxu1 %v888_v25 }
  0x1f   :  { %765 = vmatpush3.bf16.msra.mxu0 %v884_v23 }
  0x21   :  { %845 = vmatpush3.bf16.msra.mxu1 %v888_v25 }
  0x22   :  { %407 = vmatmul.mubr.bf16.vlgmr.msra.gmra.mrb[0].mxu0 %v885_v26 }
  0x23   :  { %414 = vmatprep.mubr.bf16.mxu0 %v891_v27 }
  0x24   :  { %847 = vmatmul.mubr.bf16.vlgmr.msra.gmra.mrb[0].mxu1 %v890_v28 }
  0x25   :  { %850 = vmatprep.mubr.bf16.mxu1 %v897_v29 }
  0x2a   :  { %415 = vmatmul.mubr.bf16.gmra.mrb[4].mxu0 %v893_v30 }
  0x2b   :  { %422 = vmatprep.mubr.bf16.mxu0 %v894_v31 }
  0x2c   :  { %851 = vmatmul.mubr.bf16.gmra.mrb[4].mxu1 %v898_v32 }
  0x2d   :  { %854 = vmatprep.mubr.bf16.mxu1 %v905_v33 }
  0x32   :  { %423 = vmatmul.mubr.bf16.gmra.mrb[8].mxu0 %v896_v34 }
  0x33   :  { %430 = vmatprep.mubr.bf16.mxu0 %v899_v35 }
  0x34   :  { %855 = vmatmul.mubr.bf16.gmra.mrb[8].mxu1 %v906_v36 }
  0x35   :  { %858 = vmatprep.mubr.bf16.mxu1 %v913_v37 }
  0x3a   :  { %431 = vmatmul.mubr.bf16.gmra.mrb[12].mxu0 %v901_v38 }
  0x3b   :  { %438 = vmatprep.mubr.bf16.mxu0 %v902_v39 }
  0x3c   :  { %859 = vmatmul.mubr.bf16.gmra.mrb[12].mxu1 %v914_v40 }
  0x42   :  { %439 = vmatmul.mubr.bf16.gmra.mrb[16].mxu0 %v904_v41 }
  0x43   :  { %446 = vmatprep.mubr.bf16.mxu0 %v907_v42 }
  0x4a   :  { %447 = vmatmul.mubr.bf16.gmra.mrb[20].mxu0 %v909_v43 }
  0x4b   :  { %454 = vmatprep.mubr.bf16.mxu0 %v910_v44 }
  0x52   :  { %455 = vmatmul.mubr.bf16.gmra.mrb[24].mxu0 %v912_v45 }
  0x53   :  { %462 = vmatprep.mubr.bf16.mxu0 %v915_v46 }
  0x5a   :  { %463 = vmatmul.mubr.bf16.gmra.mrb[28].mxu0 %v917_v47 }
  0xf5   :  { %v766_v48 = vpop.f32.mrb[0].mxu0 }
  0xf6   :  { %v767_v49 = vpop.f32.mrb[1].mxu0 }
  0xf7   :  { %v768_v51 = vadd.f32 %v767_v49, %v766_v48  ;;  %v769_v52 = vpop.f32.mrb[2].mxu0  ;;  %v848_v54 = vpop.f32.mrb[0].mxu1 }
  0xf8   :  { %v770_v53 = vpop.f32.mrb[3].mxu0  ;;  %v505_v57 = vpop.f32.mrb[1].mxu1 }
  0xf9   :  { %v771_v55 = vadd.f32 %v770_v53, %v769_v52  ;;  %v409_v56 = vadd.f32 %v768_v51, %v1085_v50  ;;  %v849_v58 = vpop.f32.mrb[2].mxu1 }
  0xfa   :  { %v508_v61 = vpop.f32.mrb[3].mxu1 }
  0xfb   :  { %v506_v59 = vadd.f32 %v505_v57, %v409_v56  ;;  %v412_v60 = vadd.f32 %v771_v55, %v1085_v50 }
  0xfd   :  { %v568_v62 = vmax.f32 %v506_v59, 0.0  ;;  %v509_v63 = vadd.f32 %v508_v61, %v412_v60  ;;  %v772_v0 = vpop.f32.mrb[4].mxu0 }
  0xfe   :  { %v773_v1 = vpop.f32.mrb[5].mxu0 }
  0xff   :  { %v734_v2 = vpack.c.bf16 %v568_v62, %v568_v62  ;;  %v569_v3 = vmax.f32 %v509_v63, 0.0  ;;  %v774_v4 = vadd.f32 %v773_v1, %v772_v0  ;;  %v775_v5 = vpop.f32.mrb[6].mxu0  ;;  %v852_v7 = vpop.f32.mrb[4].mxu1 }
 0x100   :  { %v776_v6 = vpop.f32.mrb[7].mxu0  ;;  %v521_v11 = vpop.f32.mrb[5].mxu1 }
 0x101   :  { %649 = vst.msk [vmem:[%s1176_s3] sm:$0xf] %vm648_vm0, %v734_v2  ;;  %v735_v8 = vpack.c.bf16 %v569_v3, %v569_v3  ;;  %v417_v9 = vadd.f32 %v774_v4, %v1085_v50  ;;  %v777_v10 = vadd.f32 %v776_v6, %v775_v5  ;;  %v853_v12 = vpop.f32.mrb[6].mxu1 }
 0x102   :  { %v524_v15 = vpop.f32.mrb[7].mxu1 }
 0x103   :  { %650 = vst.msk [vmem:[%s1176_s3 + $0x4] sm:$0xf] %vm648_vm0, %v735_v8  ;;  %v514_v13 = vadd.f32 %v848_v54, %v417_v9  ;;  %v420_v14 = vadd.f32 %v777_v10, %v1085_v50 }
 0x105   :  { %v570_v16 = vmax.f32 %v514_v13, 0.0  ;;  %v517_v17 = vadd.f32 %v849_v58, %v420_v14  ;;  %v778_v18 = vpop.f32.mrb[8].mxu0 }
 0x106   :  { %v779_v19 = vpop.f32.mrb[9].mxu0 }
 0x107   :  { %v736_v20 = vpack.c.bf16 %v570_v16, %v570_v16  ;;  %v571_v21 = vmax.f32 %v517_v17, 0.0  ;;  %v780_v22 = vadd.f32 %v779_v19, %v778_v18  ;;  %v781_v23 = vpop.f32.mrb[10].mxu0  ;;  %v856_v25 = vpop.f32.mrb[8].mxu1 }
 0x108   :  { %v782_v24 = vpop.f32.mrb[11].mxu0  ;;  %v537_v29 = vpop.f32.mrb[9].mxu1 }
 0x109   :  { %651 = vst.msk [vmem:[%s1176_s3 + $0x8] sm:$0xf] %vm648_vm0, %v736_v20  ;;  %v737_v26 = vpack.c.bf16 %v571_v21, %v571_v21  ;;  %v783_v27 = vadd.f32 %v782_v24, %v781_v23  ;;  %v425_v28 = vadd.f32 %v780_v22, %v1085_v50  ;;  %v857_v30 = vpop.f32.mrb[10].mxu1 }
 0x10a   :  { %v540_v33 = vpop.f32.mrb[11].mxu1 }
 0x10b   :  { %652 = vst.msk [vmem:[%s1176_s3 + $0xc] sm:$0xf] %vm648_vm0, %v737_v26  ;;  %v522_v31 = vadd.f32 %v521_v11, %v425_v28  ;;  %v428_v32 = vadd.f32 %v783_v27, %v1085_v50 }
 0x10d   :  { %v572_v34 = vmax.f32 %v522_v31, 0.0  ;;  %v525_v35 = vadd.f32 %v524_v15, %v428_v32  ;;  %v784_v36 = vpop.f32.mrb[12].mxu0 }
 0x10e   :  { %v785_v37 = vpop.f32.mrb[13].mxu0 }
 0x10f   :  { %v738_v38 = vpack.c.bf16 %v572_v34, %v572_v34  ;;  %v573_v39 = vmax.f32 %v525_v35, 0.0  ;;  %v786_v40 = vadd.f32 %v785_v37, %v784_v36  ;;  %v787_v41 = vpop.f32.mrb[14].mxu0  ;;  %v1109_v43 = vpop.f32.mrb[12].mxu1 }
 0x110   :  { %v788_v42 = vpop.f32.mrb[15].mxu0  ;;  %v553_v47 = vpop.f32.mrb[13].mxu1 }
 0x111   :  { %653 = vst.msk [vmem:[%s1176_s3 + $0x10] sm:$0xf] %vm648_vm0, %v738_v38  ;;  %v739_v44 = vpack.c.bf16 %v573_v39, %v573_v39  ;;  %v433_v45 = vadd.f32 %v786_v40, %v1085_v50  ;;  %v789_v46 = vadd.f32 %v788_v42, %v787_v41  ;;  %v1116_v48 = vpop.f32.mrb[14].mxu1 }
 0x112   :  { %v556_v52 = vpop.f32.mrb[15].mxu1 }
 0x113   :  { %654 = vst.msk [vmem:[%s1176_s3 + $0x14] sm:$0xf] %vm648_vm0, %v739_v44  ;;  %v530_v49 = vadd.f32 %v852_v7, %v433_v45  ;;  %v436_v51 = vadd.f32 %v789_v46, %v1085_v50 }
 0x115   :  { %v574_v53 = vmax.f32 %v530_v49, 0.0  ;;  %v533_v54 = vadd.f32 %v853_v12, %v436_v51  ;;  %v790_v55 = vpop.f32.mrb[16].mxu0 }
 0x116   :  { %v791_v56 = vpop.f32.mrb[17].mxu0 }
 0x117   :  { %v740_v57 = vpack.c.bf16 %v574_v53, %v574_v53  ;;  %v575_v58 = vmax.f32 %v533_v54, 0.0  ;;  %v792_v59 = vadd.f32 %v791_v56, %v790_v55  ;;  %v793_v60 = vpop.f32.mrb[18].mxu0 }
 0x118   :  { %v794_v61 = vpop.f32.mrb[19].mxu0 }
 0x119   :  { %655 = vst.msk [vmem:[%s1176_s3 + $0x18] sm:$0xf] %vm648_vm0, %v740_v57  ;;  %v741_v62 = vpack.c.bf16 %v575_v58, %v575_v58  ;;  %v795_v63 = vadd.f32 %v794_v61, %v793_v60  ;;  %v441_v0 = vadd.f32 %v792_v59, %v1085_v50 }
 0x11b   :  { %656 = vst.msk [vmem:[%s1176_s3 + $0x1c] sm:$0xf] %vm648_vm0, %v741_v62  ;;  %v538_v1 = vadd.f32 %v537_v29, %v441_v0  ;;  %v444_v2 = vadd.f32 %v795_v63, %v1085_v50 }
 0x11d   :  { %v576_v3 = vmax.f32 %v538_v1, 0.0  ;;  %v541_v4 = vadd.f32 %v540_v33, %v444_v2  ;;  %v796_v5 = vpop.f32.mrb[20].mxu0 }
 0x11e   :  { %v797_v6 = vpop.f32.mrb[21].mxu0 }
 0x11f   :  { %v742_v7 = vpack.c.bf16 %v576_v3, %v576_v3  ;;  %v577_v8 = vmax.f32 %v541_v4, 0.0  ;;  %v798_v9 = vadd.f32 %v797_v6, %v796_v5  ;;  %v799_v10 = vpop.f32.mrb[22].mxu0 }
 0x120   :  { %v800_v11 = vpop.f32.mrb[23].mxu0 }
 0x121   :  { %657 = vst.msk [vmem:[%s1176_s3 + $0x20] sm:$0xf] %vm648_vm0, %v742_v7  ;;  %v743_v12 = vpack.c.bf16 %v577_v8, %v577_v8  ;;  %v449_v13 = vadd.f32 %v798_v9, %v1085_v50  ;;  %v801_v14 = vadd.f32 %v800_v11, %v799_v10 }
 0x123   :  { %658 = vst.msk [vmem:[%s1176_s3 + $0x24] sm:$0xf] %vm648_vm0, %v743_v12  ;;  %v546_v15 = vadd.f32 %v856_v25, %v449_v13  ;;  %v452_v16 = vadd.f32 %v801_v14, %v1085_v50 }
 0x125   :  { %v578_v17 = vmax.f32 %v546_v15, 0.0  ;;  %v549_v18 = vadd.f32 %v857_v30, %v452_v16  ;;  %v802_v19 = vpop.f32.mrb[24].mxu0 }
 0x126   :  { %v803_v20 = vpop.f32.mrb[25].mxu0 }
 0x127   :  { %v744_v21 = vpack.c.bf16 %v578_v17, %v578_v17  ;;  %v579_v22 = vmax.f32 %v549_v18, 0.0  ;;  %v804_v23 = vadd.f32 %v803_v20, %v802_v19  ;;  %v805_v24 = vpop.f32.mrb[26].mxu0 }
 0x128   :  { %v806_v26 = vpop.f32.mrb[27].mxu0 }
 0x129   :  { %659 = vst.msk [vmem:[%s1176_s3 + $0x28] sm:$0xf] %vm648_vm0, %v744_v21  ;;  %v745_v27 = vpack.c.bf16 %v579_v22, %v579_v22  ;;  %v807_v28 = vadd.f32 %v806_v26, %v805_v24  ;;  %v457_v25 = vadd.f32 %v804_v23, %v1085_v50 }
 0x12b   :  { %660 = vst.msk [vmem:[%s1176_s3 + $0x2c] sm:$0xf] %vm648_vm0, %v745_v27  ;;  %v554_v29 = vadd.f32 %v553_v47, %v457_v25  ;;  %v460_v30 = vadd.f32 %v807_v28, %v1085_v50 }
 0x12d   :  { %v580_v31 = vmax.f32 %v554_v29, 0.0  ;;  %v557_v32 = vadd.f32 %v556_v52, %v460_v30  ;;  %v808_v33 = vpop.f32.mrb[28].mxu0 }
 0x12e   :  { %v809_v34 = vpop.f32.mrb[29].mxu0 }
 0x12f   :  { %v746_v35 = vpack.c.bf16 %v580_v31, %v580_v31  ;;  %v581_v36 = vmax.f32 %v557_v32, 0.0  ;;  %v810_v37 = vadd.f32 %v809_v34, %v808_v33  ;;  %v811_v38 = vpop.f32.mrb[30].mxu0 }
 0x130   :  { %v812_v39 = vpop.f32.mrb[31].mxu0 }
 0x131   :  { %661 = vst.msk [vmem:[%s1176_s3 + $0x30] sm:$0xf] %vm648_vm0, %v746_v35  ;;  %v747_v40 = vpack.c.bf16 %v581_v36, %v581_v36  ;;  %v465_v41 = vadd.f32 %v810_v37, %v1085_v50  ;;  %v813_v42 = vadd.f32 %v812_v39, %v811_v38 }
 0x133   :  { %662 = vst.msk [vmem:[%s1176_s3 + $0x34] sm:$0xf] %vm648_vm0, %v747_v40  ;;  %v562_v44 = vadd.f32 %v1109_v43, %v465_v41  ;;  %v468_v45 = vadd.f32 %v813_v42, %v1085_v50 }
 0x135   :  { %v582_v46 = vmax.f32 %v562_v44, 0.0  ;;  %v565_v47 = vadd.f32 %v1116_v48, %v468_v45 }
 0x137   :  { %v748_v49 = vpack.c.bf16 %v582_v46, %v582_v46  ;;  %v583_v51 = vmax.f32 %v565_v47, 0.0 }
 0x139   :  { %663 = vst.msk [vmem:[%s1176_s3 + $0x38] sm:$0xf] %vm648_vm0, %v748_v49  ;;  %v749_v52 = vpack.c.bf16 %v583_v51, %v583_v51 }
 0x13b   :  { %664 = vst.msk [vmem:[%s1176_s3 + $0x3c] sm:$0xf] %vm648_vm0, %v749_v52 }

// kernel: ppo_policy_forward.5
= control target key start
LH: loop header
LB: loop body
LE: loop exit
PB: predicated region body
PF: predicated region fallthrough
CT: control target
= control target key end

     0   :  { %vm444_vm0 = vcmask 519168   ;;  %s761_s1 = inlined_call_operand.vmem [shape: bf16[512,64], index: 1, kind: input, shape index: {}]   ;;  %s762_s0 = inlined_call_operand.vmem [shape: bf16[32,512], index: 0, kind: input, shape index: {}]   ;;  %s763_s2 = inlined_call_operand.vmem [shape: f32[1,64], index: 2, kind: input, shape index: {}]   ;;  %s764_s3 = inlined_call_operand.vmem [shape: bf16[32,64], index: 3, kind: output, shape index: {}]  }
   0x1   :  { %v558_v0 = vld [vmem:[%s761_s1 + $0x40] sm:$0xff]   ;;  %v562_v4 = vld [vmem:[%s761_s1 + $0x48] sm:$0xff]   ;;  %v566_v8 = vld [vmem:[%s761_s1 + $0x50] sm:$0xff]  }
   0x2   :  { %v559_v1 = vld [vmem:[%s761_s1 + $0xc0] sm:$0xff]   ;;  %502 = vmatprep.subr.bf16.mxu0 %v558_v0  ;;  %v563_v5 = vld [vmem:[%s761_s1 + $0xc8] sm:$0xff]   ;;  %v567_v9 = vld [vmem:[%s761_s1 + $0xd0] sm:$0xff]  }
   0x3   :  { %v560_v2 = vld [vmem:[%s761_s1] sm:$0xff]   ;;  %530 = vmatprep.subr.bf16.mxu1 %v559_v1  ;;  %v564_v6 = vld [vmem:[%s761_s1 + $0x8] sm:$0xff]   ;;  %v568_v10 = vld [vmem:[%s761_s1 + $0x10] sm:$0xff]  }
   0x4   :  { %v561_v3 = vld [vmem:[%s761_s1 + $0x80] sm:$0xff]   ;;  %503 = vmatpush3.bf16.msra.mxu0 %v560_v2  ;;  %v565_v7 = vld [vmem:[%s761_s1 + $0x88] sm:$0xff]   ;;  %v569_v11 = vld [vmem:[%s761_s1 + $0x90] sm:$0xff]  }
   0x5   :  { %531 = vmatpush3.bf16.msra.mxu1 %v561_v3  ;;  %504 = vmatprep.subr.bf16.mxu0 %v562_v4  ;;  %v570_v12 = vld [vmem:[%s761_s1 + $0x58] sm:$0xff]   ;;  %v574_v16 = vld [vmem:[%s761_s1 + $0x60] sm:$0xff]   ;;  %v578_v20 = vld [vmem:[%s761_s1 + $0x68] sm:$0xff]  }
   0x6   :  { %532 = vmatprep.subr.bf16.mxu1 %v563_v5  ;;  %v571_v13 = vld [vmem:[%s761_s1 + $0xd8] sm:$0xff]   ;;  %v575_v17 = vld [vmem:[%s761_s1 + $0xe0] sm:$0xff]   ;;  %v579_v21 = vld [vmem:[%s761_s1 + $0xe8] sm:$0xff]  }
   0x7   :  { %v572_v14 = vld [vmem:[%s761_s1 + $0x18] sm:$0xff]   ;;  %v576_v18 = vld [vmem:[%s761_s1 + $0x20] sm:$0xff]   ;;  %v580_v22 = vld [vmem:[%s761_s1 + $0x28] sm:$0xff]  }
   0x8   :  { %505 = vmatpush3.bf16.msra.mxu0 %v564_v6  ;;  %v573_v15 = vld [vmem:[%s761_s1 + $0x98] sm:$0xff]   ;;  %v577_v19 = vld [vmem:[%s761_s1 + $0xa0] sm:$0xff]   ;;  %v581_v23 = vld [vmem:[%s761_s1 + $0xa8] sm:$0xff]  }
   0x9   :  { %533 = vmatpush3.bf16.msra.mxu1 %v565_v7  ;;  %506 = vmatprep.subr.bf16.mxu0 %v566_v8  ;;  %v582_v24 = vld [vmem:[%s761_s1 + $0x70] sm:$0xff]   ;;  %v586_v28 = vld [vmem:[%s761_s1 + $0x78] sm:$0xff]   ;;  %v453_v42 = vld [vmem:[%s763_s2] ss:$0 sm:$0xff] }
   0xa   :  { %534 = vmatprep.subr.bf16.mxu1 %v567_v9  ;;  %v583_v25 = vld [vmem:[%s761_s1 + $0xf0] sm:$0xff]   ;;  %v587_v29 = vld [vmem:[%s761_s1 + $0xf8] sm:$0xff]  }
   0xb   :  { %v584_v26 = vld [vmem:[%s761_s1 + $0x30] sm:$0xff]   ;;  %v588_v30 = vld [vmem:[%s761_s1 + $0x38] sm:$0xff]  }
   0xc   :  { %507 = vmatpush3.bf16.msra.mxu0 %v568_v10  ;;  %v585_v27 = vld [vmem:[%s761_s1 + $0xb0] sm:$0xff]   ;;  %v589_v31 = vld [vmem:[%s761_s1 + $0xb8] sm:$0xff]  }
   0xd   :  { %535 = vmatpush3.bf16.msra.mxu1 %v569_v11  ;;  %508 = vmatprep.subr.bf16.mxu0 %v570_v12  ;;  %v590_v32 = vld [vmem:[%s762_s0] ss:$16 sps:$4 sm:$0xff]   ;;  %v592_v33 = vld [vmem:[%s762_s0 + $0x4] ss:$16 sps:$4 sm:$0xff]   ;;  %v593_v34 = vld [vmem:[%s762_s0 + $0x8] ss:$16 sps:$4 sm:$0xff]  }
   0xe   :  { %536 = vmatprep.subr.bf16.mxu1 %v571_v13  ;;  %v595_v35 = vld [vmem:[%s762_s0 + $0xc] ss:$16 sps:$4 sm:$0xff]   ;;  %358 = vmatprep.mubr.bf16.mxu0 %v592_v33  ;;  %v596_v36 = vld [vmem:[%s762_s0 + $0x24] ss:$16 sps:$4 sm:$0xff]   ;;  %v600_v38 = vld [vmem:[%s762_s0 + $0x20] ss:$16 sps:$4 sm:$0xff]  }
   0xf   :  { %407 = vmatprep.mubr.bf16.mxu1 %v595_v35  ;;  %v598_v37 = vld [vmem:[%s762_s0 + $0x2c] ss:$16 sps:$4 sm:$0xff]   ;;  %v601_v39 = vld [vmem:[%s762_s0 + $0x28] ss:$16 sps:$4 sm:$0xff]  }
  0x10   :  { %509 = vmatpush3.bf16.msra.mxu0 %v572_v14 }
  0x11   :  { %537 = vmatpush3.bf16.msra.mxu1 %v573_v15  ;;  %510 = vmatprep.subr.bf16.mxu0 %v574_v16 }
  0x12   :  { %538 = vmatprep.subr.bf16.mxu1 %v575_v17 }
  0x14   :  { %511 = vmatpush3.bf16.msra.mxu0 %v576_v18 }
  0x15   :  { %539 = vmatpush3.bf16.msra.mxu1 %v577_v19  ;;  %512 = vmatprep.subr.bf16.mxu0 %v578_v20 }
  0x16   :  { %540 = vmatprep.subr.bf16.mxu1 %v579_v21 }
  0x18   :  { %513 = vmatpush3.bf16.msra.mxu0 %v580_v22 }
  0x19   :  { %541 = vmatpush3.bf16.msra.mxu1 %v581_v23  ;;  %514 = vmatprep.subr.bf16.mxu0 %v582_v24 }
  0x1a   :  { %542 = vmatprep.subr.bf16.mxu1 %v583_v25 }
  0x1c   :  { %515 = vmatpush3.bf16.msra.mxu0 %v584_v26 }
  0x1d   :  { %543 = vmatpush3.bf16.msra.mxu1 %v585_v27  ;;  %516 = vmatprep.subr.bf16.mxu0 %v586_v28 }
  0x1e   :  { %544 = vmatprep.subr.bf16.mxu1 %v587_v29 }
  0x20   :  { %517 = vmatpush3.bf16.msra.mxu0 %v588_v30 }
  0x21   :  { %545 = vmatpush3.bf16.msra.mxu1 %v589_v31 }
  0x23   :  { %359 = vmatmul.mubr.bf16.vlgmr.msra.gmra.mrb[0].mxu0 %v590_v32 }
  0x24   :  { %408 = vmatmul.mubr.bf16.vlgmr.msra.gmra.mrb[0].mxu1 %v593_v34  ;;  %366 = vmatprep.mubr.bf16.mxu0 %v596_v36 }
  0x25   :  { %415 = vmatprep.mubr.bf16.mxu1 %v598_v37 }
  0x2b   :  { %367 = vmatmul.mubr.bf16.gmra.mrb[4].mxu0 %v600_v38 }
  0x2c   :  { %416 = vmatmul.mubr.bf16.gmra.mrb[4].mxu1 %v601_v39 }
  0xf6   :  { %v518_v40 = vpop.f32.mrb[0].mxu0 }
  0xf7   :  { %v546_v41 = vpop.f32.mrb[0].mxu1  ;;  %v519_v43 = vpop.f32.mrb[1].mxu0 }
  0xf8   :  { %v520_v44 = vadd.f32 %v519_v43, %v518_v40  ;;  %v547_v45 = vpop.f32.mrb[1].mxu1  ;;  %v521_v46 = vpop.f32.mrb[2].mxu0 }
  0xf9   :  { %v548_v47 = vadd.f32 %v547_v45, %v546_v41  ;;  %v549_v48 = vpop.f32.mrb[2].mxu1  ;;  %v522_v49 = vpop.f32.mrb[3].mxu0 }
  0xfa   :  { %v361_v50 = vadd.f32 %v520_v44, %v453_v42  ;;  %v523_v51 = vadd.f32 %v522_v49, %v521_v46  ;;  %v550_v52 = vpop.f32.mrb[3].mxu1 }
  0xfb   :  { %v551_v53 = vadd.f32 %v550_v52, %v549_v48 }
  0xfc   :  { %v410_v54 = vadd.f32 %v548_v47, %v361_v50  ;;  %v364_v55 = vadd.f32 %v523_v51, %v453_v42 }
  0xfe   :  { %v424_v56 = vmax.f32 %v410_v54, 0.0  ;;  %v413_v57 = vadd.f32 %v551_v53, %v364_v55  ;;  %v524_v58 = vpop.f32.mrb[4].mxu0 }
  0xff   :  { %v552_v59 = vpop.f32.mrb[4].mxu1  ;;  %v525_v60 = vpop.f32.mrb[5].mxu0 }
 0x100   :  { %v498_v61 = vpack.c.bf16 %v424_v56, %v424_v56  ;;  %v425_v62 = vmax.f32 %v413_v57, 0.0  ;;  %v526_v63 = vadd.f32 %v525_v60, %v524_v58  ;;  %v553_v0 = vpop.f32.mrb[5].mxu1  ;;  %v527_v1 = vpop.f32.mrb[6].mxu0 }
 0x101   :  { %v554_v2 = vadd.f32 %v553_v0, %v552_v59  ;;  %v555_v3 = vpop.f32.mrb[6].mxu1  ;;  %v528_v4 = vpop.f32.mrb[7].mxu0 }
 0x102   :  { %445 = vst.msk [vmem:[%s764_s3] sm:$0xf] %vm444_vm0, %v498_v61  ;;  %v499_v5 = vpack.c.bf16 %v425_v62, %v425_v62  ;;  %v369_v6 = vadd.f32 %v526_v63, %v453_v42  ;;  %v529_v7 = vadd.f32 %v528_v4, %v527_v1  ;;  %v556_v8 = vpop.f32.mrb[7].mxu1 }
 0x103   :  { %v557_v9 = vadd.f32 %v556_v8, %v555_v3 }
 0x104   :  { %446 = vst.msk [vmem:[%s764_s3 + $0x4] sm:$0xf] %vm444_vm0, %v499_v5  ;;  %v418_v10 = vadd.f32 %v554_v2, %v369_v6  ;;  %v372_v11 = vadd.f32 %v529_v7, %v453_v42 }
 0x106   :  { %v426_v12 = vmax.f32 %v418_v10, 0.0  ;;  %v421_v13 = vadd.f32 %v557_v9, %v372_v11 }
 0x108   :  { %v500_v14 = vpack.c.bf16 %v426_v12, %v426_v12  ;;  %v427_v15 = vmax.f32 %v421_v13, 0.0 }
 0x10a   :  { %447 = vst.msk [vmem:[%s764_s3 + $0x8] sm:$0xf] %vm444_vm0, %v500_v14  ;;  %v501_v16 = vpack.c.bf16 %v427_v15, %v427_v15 }
 0x10c   :  { %448 = vst.msk [vmem:[%s764_s3 + $0xc] sm:$0xf] %vm444_vm0, %v501_v16 }

// kernel: ppo_policy_forward.6
= control target key start
LH: loop header
LB: loop body
LE: loop exit
PB: predicated region body
PF: predicated region fallthrough
CT: control target
= control target key end

     0   :  { %vm372_vm0 = vcmask 523264   ;;  %vm546_vm1 = vcmask 519168   ;;  %s909_s1 = inlined_call_operand.vmem [shape: bf16[576,64], index: 1, kind: input, shape index: {}]   ;;  %s910_s0 = inlined_call_operand.vmem [shape: bf16[32,576], index: 0, kind: input, shape index: {}]   ;;  %s911_s2 = inlined_call_operand.vmem [shape: f32[1,64], index: 2, kind: input, shape index: {}]   ;;  %s912_s3 = inlined_call_operand.vmem [shape: bf16[32,64], index: 3, kind: output, shape index: {}]  }
   0x1   :  { %v686_v0 = vld [vmem:[%s909_s1 + $0x40] sm:$0xff]   ;;  %v690_v4 = vld [vmem:[%s909_s1 + $0x48] sm:$0xff]   ;;  %v694_v8 = vld [vmem:[%s909_s1 + $0x50] sm:$0xff]  }
   0x2   :  { %v687_v1 = vld [vmem:[%s909_s1] sm:$0xff]   ;;  %612 = vmatprep.subr.bf16.mxu0 %v686_v0  ;;  %v691_v5 = vld [vmem:[%s909_s1 + $0x8] sm:$0xff]   ;;  %v695_v9 = vld [vmem:[%s909_s1 + $0x10] sm:$0xff]  }
   0x3   :  { %v688_v2 = vld [vmem:[%s909_s1 + $0xc0] sm:$0xff]   ;;  %613 = vmatpush3.bf16.msra.mxu0 %v687_v1  ;;  %v692_v6 = vld [vmem:[%s909_s1 + $0xc8] sm:$0xff]   ;;  %v696_v10 = vld [vmem:[%s909_s1 + $0xd0] sm:$0xff]  }
   0x4   :  { %v689_v3 = vld [vmem:[%s909_s1 + $0x80] sm:$0xff]   ;;  %640 = vmatprep.subr.bf16.mxu1 %v688_v2  ;;  %614 = vmatprep.subr.bf16.mxu0 %v690_v4  ;;  %v693_v7 = vld [vmem:[%s909_s1 + $0x88] sm:$0xff]   ;;  %v697_v11 = vld [vmem:[%s909_s1 + $0x90] sm:$0xff]  }
   0x5   :  { %641 = vmatpush3.bf16.msra.mxu1 %v689_v3  ;;  %v698_v12 = vld [vmem:[%s909_s1 + $0x58] sm:$0xff]   ;;  %v702_v16 = vld [vmem:[%s909_s1 + $0x60] sm:$0xff]   ;;  %v706_v20 = vld [vmem:[%s909_s1 + $0x68] sm:$0xff]  }
   0x6   :  { %642 = vmatprep.subr.bf16.mxu1 %v692_v6  ;;  %v699_v13 = vld [vmem:[%s909_s1 + $0x18] sm:$0xff]   ;;  %v703_v17 = vld [vmem:[%s909_s1 + $0x20] sm:$0xff]   ;;  %v707_v21 = vld [vmem:[%s909_s1 + $0x28] sm:$0xff]  }
   0x7   :  { %615 = vmatpush3.bf16.msra.mxu0 %v691_v5  ;;  %v700_v14 = vld [vmem:[%s909_s1 + $0xd8] sm:$0xff]   ;;  %v704_v18 = vld [vmem:[%s909_s1 + $0xe0] sm:$0xff]   ;;  %v708_v22 = vld [vmem:[%s909_s1 + $0xe8] sm:$0xff]  }
   0x8   :  { %616 = vmatprep.subr.bf16.mxu0 %v694_v8  ;;  %v701_v15 = vld [vmem:[%s909_s1 + $0x98] sm:$0xff]   ;;  %v705_v19 = vld [vmem:[%s909_s1 + $0xa0] sm:$0xff]   ;;  %v709_v23 = vld [vmem:[%s909_s1 + $0xa8] sm:$0xff]  }
   0x9   :  { %643 = vmatpush3.bf16.msra.mxu1 %v693_v7  ;;  %v710_v24 = vld [vmem:[%s909_s1 + $0x70] sm:$0xff]   ;;  %v714_v28 = vld [vmem:[%s909_s1 + $0x78] sm:$0xff]   ;;  %v721_v34 = vld [vmem:[%s909_s1 + $0x100] sm:$0xff]  }
   0xa   :  { %644 = vmatprep.subr.bf16.mxu1 %v696_v10  ;;  %v711_v25 = vld [vmem:[%s909_s1 + $0x30] sm:$0xff]   ;;  %v715_v29 = vld [vmem:[%s909_s1 + $0x38] sm:$0xff]   ;;  %v724_v36 = vld [vmem:[%s910_s0 + $0xc] ss:$20 sps:$4 sm:$0xff]  }
   0xb   :  { %617 = vmatpush3.bf16.msra.mxu0 %v695_v9  ;;  %v712_v26 = vld [vmem:[%s909_s1 + $0xf0] sm:$0xff]   ;;  %v716_v30 = vld [vmem:[%s909_s1 + $0xf8] sm:$0xff]   ;;  %v725_v37 = vld [vmem:[%s909_s1 + $0x108] sm:$0xff]   ;;  %460 = vmatprep.mubr.bf16.mxu1 %v724_v36 }
   0xc   :  { %618 = vmatprep.subr.bf16.mxu0 %v698_v12  ;;  %v713_v27 = vld [vmem:[%s909_s1 + $0xb0] sm:$0xff]   ;;  %v719_v32 = vld [vmem:[%s910_s0 + $0x4] ss:$20 sps:$4 sm:$0xff]   ;;  %v722_v35 = vld [vmem:[%s910_s0 + $0x8] ss:$20 sps:$4 sm:$0xff]  }
   0xd   :  { %645 = vmatpush3.bf16.msra.mxu1 %v697_v11  ;;  %v717_v31 = vld [vmem:[%s910_s0] ss:$20 sps:$4 sm:$0xff]   ;;  %v720_v33 = vld [vmem:[%s909_s1 + $0xb8] sm:$0xff]   ;;  %411 = vmatprep.mubr.bf16.mxu0 %v719_v32  ;;  %v732_v42 = vld [vmem:[%s910_s0 + $0x30] ss:$20 sps:$4 sm:$0xff]  }
   0xe   :  { %646 = vmatprep.subr.bf16.mxu1 %v700_v14  ;;  %v726_v38 = vld [vmem:[%s910_s0 + $0x2c] ss:$20 sps:$4 sm:$0xff]   ;;  %v728_v39 = vld [vmem:[%s910_s0 + $0x28] ss:$20 sps:$4 sm:$0xff]   ;;  %v729_v40 = vld [vmem:[%s909_s1 + $0x110] sm:$0xff]  }
   0xf   :  { %619 = vmatpush3.bf16.msra.mxu0 %v699_v13  ;;  %v730_v41 = vld [vmem:[%s910_s0 + $0x34] ss:$20 sps:$4 sm:$0xff]   ;;  %v733_v43 = vld [vmem:[%s909_s1 + $0x118] sm:$0xff]   ;;  %v734_v44 = vld [vmem:[%s910_s0 + $0x10] ss:$20 sps:$4 sm:$0xff]  }
  0x10   :  { %620 = vmatprep.subr.bf16.mxu0 %v702_v16  ;;  %v735_v45 = vld [vmem:[%s910_s0 + $0x38] ss:$20 sps:$4 sm:$0xff]   ;;  %v555_v47 = vld [vmem:[%s911_s2] ss:$0 sm:$0xff] }
  0x11   :  { %647 = vmatpush3.bf16.msra.mxu1 %v701_v15 }
  0x12   :  { %648 = vmatprep.subr.bf16.mxu1 %v704_v18 }
  0x13   :  { %621 = vmatpush3.bf16.msra.mxu0 %v703_v17 }
  0x14   :  { %622 = vmatprep.subr.bf16.mxu0 %v706_v20 }
  0x15   :  { %649 = vmatpush3.bf16.msra.mxu1 %v705_v19 }
  0x16   :  { %650 = vmatprep.subr.bf16.mxu1 %v708_v22 }
  0x17   :  { %623 = vmatpush3.bf16.msra.mxu0 %v707_v21 }
  0x18   :  { %624 = vmatprep.subr.bf16.mxu0 %v710_v24 }
  0x19   :  { %651 = vmatpush3.bf16.msra.mxu1 %v709_v23 }
  0x1a   :  { %652 = vmatprep.subr.bf16.mxu1 %v712_v26 }
  0x1b   :  { %625 = vmatpush3.bf16.msra.mxu0 %v711_v25 }
  0x1c   :  { %626 = vmatprep.subr.bf16.mxu0 %v714_v28 }
  0x1d   :  { %653 = vmatpush3.bf16.msra.mxu1 %v713_v27 }
  0x1e   :  { %654 = vmatprep.subr.bf16.mxu1 %v716_v30 }
  0x1f   :  { %627 = vmatpush3.bf16.msra.mxu0 %v715_v29 }
  0x20   :  { %674 = vmatprep.subr.bf16.mxu0 %v721_v34 }
  0x21   :  { %655 = vmatpush3.bf16.msra.mxu1 %v720_v33 }
  0x22   :  { %412 = vmatmul.mubr.bf16.vlgmr.msra.gmra.mrb[0].mxu0 %v717_v31 }
  0x23   :  { %675 = vmatpush3.bf16.msra.mxu0 %v721_v34  ;;  %419 = vmatprep.mubr.bf16.mxu0 %v726_v38 }
  0x24   :  { %461 = vmatmul.mubr.bf16.vlgmr.msra.gmra.mrb[0].mxu1 %v722_v35  ;;  %676 = vmatprep.subr.bf16.mxu0 %v725_v37 }
  0x25   :  { %468 = vmatprep.mubr.bf16.mxu1 %v730_v41 }
  0x27   :  { %677 = vmatpush3.bf16.msra.mxu0 %v725_v37 }
  0x28   :  { %678 = vmatprep.subr.bf16.mxu0 %v729_v40 }
  0x2a   :  { %420 = vmatmul.mubr.bf16.gmra.mrb[4].mxu0 %v728_v39 }
  0x2b   :  { %682 = vmatprep.mubr.msk.bf16.mxu0 %vm372_vm0, %v734_v44  ;;  %679 = vmatpush3.bf16.msra.mxu0 %v729_v40 }
  0x2c   :  { %469 = vmatmul.mubr.bf16.gmra.mrb[4].mxu1 %v732_v42  ;;  %680 = vmatprep.subr.bf16.mxu0 %v733_v43 }
  0x2f   :  { %681 = vmatpush3.bf16.msra.mxu0 %v733_v43 }
  0x32   :  { %683 = vmatmul.mubr.msk.bf16.vlgmr.msra.gmra.mrb[8].mxu0 %vm372_vm0, %v735_v45 }
  0xf5   :  { %v628_v46 = vpop.f32.mrb[0].mxu0 }
  0xf6   :  { %v629_v48 = vpop.f32.mrb[1].mxu0 }
  0xf7   :  { %v630_v49 = vadd.f32 %v629_v48, %v628_v46  ;;  %v631_v50 = vpop.f32.mrb[2].mxu0  ;;  %v656_v51 = vpop.f32.mrb[0].mxu1 }
  0xf8   :  { %v632_v52 = vpop.f32.mrb[3].mxu0  ;;  %v657_v55 = vpop.f32.mrb[1].mxu1 }
  0xf9   :  { %v414_v53 = vadd.f32 %v630_v49, %v555_v47  ;;  %v633_v54 = vadd.f32 %v632_v52, %v631_v50  ;;  %v658_v56 = vadd.f32 %v657_v55, %v656_v51  ;;  %v659_v57 = vpop.f32.mrb[2].mxu1 }
  0xfa   :  { %v660_v59 = vpop.f32.mrb[3].mxu1 }
  0xfb   :  { %v417_v58 = vadd.f32 %v633_v54, %v555_v47  ;;  %v661_v60 = vadd.f32 %v660_v59, %v659_v57  ;;  %v463_v61 = vadd.f32 %v658_v56, %v414_v53 }
  0xfd   :  { %v634_v62 = vpop.f32.mrb[4].mxu0  ;;  %v466_v0 = vadd.f32 %v661_v60, %v417_v58 }
  0xfe   :  { %v635_v63 = vpop.f32.mrb[5].mxu0 }
  0xff   :  { %v636_v1 = vadd.f32 %v635_v63, %v634_v62  ;;  %v637_v2 = vpop.f32.mrb[6].mxu0  ;;  %v662_v3 = vpop.f32.mrb[4].mxu1 }
 0x100   :  { %v638_v4 = vpop.f32.mrb[7].mxu0  ;;  %v663_v7 = vpop.f32.mrb[5].mxu1 }
 0x101   :  { %v422_v5 = vadd.f32 %v636_v1, %v555_v47  ;;  %v639_v6 = vadd.f32 %v638_v4, %v637_v2  ;;  %v664_v8 = vadd.f32 %v663_v7, %v662_v3  ;;  %v665_v9 = vpop.f32.mrb[6].mxu1 }
 0x102   :  { %v666_v11 = vpop.f32.mrb[7].mxu1 }
 0x103   :  { %v425_v10 = vadd.f32 %v639_v6, %v555_v47  ;;  %v667_v12 = vadd.f32 %v666_v11, %v665_v9  ;;  %v471_v13 = vadd.f32 %v664_v8, %v422_v5 }
 0x105   :  { %v684_v14 = vpop.f32.mrb[8].mxu0  ;;  %v474_v15 = vadd.f32 %v667_v12, %v425_v10 }
 0x106   :  { %v520_v16 = vadd.f32 %v684_v14, %v471_v13  ;;  %v511_v17 = vpop.f32.mrb[9].mxu0 }
 0x107   :  { %v512_v18 = vadd.f32 %v511_v17, %v463_v61  ;;  %v685_v19 = vpop.f32.mrb[10].mxu0 }
 0x108   :  { %v528_v20 = vmax.f32 %v520_v16, 0.0  ;;  %v523_v21 = vadd.f32 %v685_v19, %v474_v15  ;;  %v514_v22 = vpop.f32.mrb[11].mxu0 }
 0x109   :  { %v526_v23 = vmax.f32 %v512_v18, 0.0  ;;  %v515_v24 = vadd.f32 %v514_v22, %v466_v0 }
 0x10a   :  { %v610_v25 = vpack.c.bf16 %v528_v20, %v528_v20  ;;  %v529_v26 = vmax.f32 %v523_v21, 0.0 }
 0x10b   :  { %v608_v27 = vpack.c.bf16 %v526_v23, %v526_v23  ;;  %v527_v28 = vmax.f32 %v515_v24, 0.0 }
 0x10c   :  { %549 = vst.msk [vmem:[%s912_s3 + $0x8] sm:$0xf] %vm546_vm1, %v610_v25  ;;  %v611_v29 = vpack.c.bf16 %v529_v26, %v529_v26 }
 0x10d   :  { %547 = vst.msk [vmem:[%s912_s3] sm:$0xf] %vm546_vm1, %v608_v27  ;;  %v609_v30 = vpack.c.bf16 %v527_v28, %v527_v28 }
 0x10e   :  { %550 = vst.msk [vmem:[%s912_s3 + $0xc] sm:$0xf] %vm546_vm1, %v611_v29 }
 0x10f   :  { %548 = vst.msk [vmem:[%s912_s3 + $0x4] sm:$0xf] %vm546_vm1, %v609_v30 }

// kernel: ppo_policy_forward.7
= control target key start
LH: loop header
LB: loop body
LE: loop exit
PB: predicated region body
PF: predicated region fallthrough
CT: control target
= control target key end

     0   :  { %19 = vsyncpa [#allocation4], 0  ;;  %v186_v28 = vlaneseq  ;;  %v1773_v36 = vmov 1966171168   ;;  %s2239_s0 = inlined_call_operand.vmem [shape: bf16[2,1024], index: 0, kind: input, shape index: {}]   ;;  %s2240_s1 = inlined_call_operand.vmem [shape: bf16[1024,128], index: 1, kind: input, shape index: {}]   ;;  %s2241_s2 = inlined_call_operand.vmem [shape: f32[1,128], index: 2, kind: input, shape index: {}]   ;;  %s2242_s3 = inlined_call_operand.vmem [shape: f32[2,2], index: 3, kind: input, shape index: {}]   ;;  %s2243_s4 = inlined_call_operand.vmem [shape: bf16[128,256], index: 4, kind: input, shape index: {}]   ;;  %s2244_s5 = inlined_call_operand.vmem [shape: bf16[2,256], index: 5, kind: input, shape index: {}]   ;;  %s2245_s6 = inlined_call_operand.vmem [shape: f32[1,256], index: 6, kind: input, shape index: {}]   ;;  %s2246_s7 = inlined_call_operand.vmem [shape: bf16[256,128], index: 7, kind: input, shape index: {}]   ;;  %s2247_s8 = inlined_call_operand.vmem [shape: f32[1,128], index: 8, kind: input, shape index: {}]   ;;  %s2248_s9 = inlined_call_operand.vmem [shape: bf16[128,2], index: 9, kind: input, shape index: {}]   ;;  %s2249_s10 = inlined_call_operand.vmem [shape: f32[1,2], index: 10, kind: input, shape index: {}]   ;;  %s2250_s11 = inlined_call_operand.vmem [shape: f32[1,2], index: 11, kind: input, shape index: {}]   ;;  %s2251_s12 = inlined_call_operand.hbm [shape: f32[2,2], index: 12, kind: output, shape index: {0}]   ;;  %s2252_s13 = inlined_call_operand.hbm [shape: f32[1,2], index: 13, kind: output, shape index: {1}]  }
   0x1   :  { %v1610_v0 = vld [vmem:[%s2240_s1 + $0x40] sm:$0xff]   ;;  %v1614_v4 = vld [vmem:[%s2240_s1 + $0x48] sm:$0xff]   ;;  %v1618_v8 = vld [vmem:[%s2240_s1 + $0x50] sm:$0xff]   ;;  %v184_v37 = vunpack.c.l.s4 %v1773_v36 }
   0x2   :  { %v1611_v1 = vld [vmem:[%s2240_s1 + $0xc0] sm:$0xff]   ;;  %1465 = vmatprep.subr.bf16.mxu0 %v1610_v0  ;;  %v1615_v5 = vld [vmem:[%s2240_s1 + $0xc8] sm:$0xff]   ;;  %v1619_v9 = vld [vmem:[%s2240_s1 + $0xd0] sm:$0xff]   ;;  %v1945_v33 = vshrl.u32 %v186_v28, 7 }
   0x3   :  { %v1612_v2 = vld [vmem:[%s2240_s1] sm:$0xff]   ;;  %1487 = vmatprep.subr.bf16.mxu1 %v1611_v1  ;;  %v1616_v6 = vld [vmem:[%s2240_s1 + $0x8] sm:$0xff]   ;;  %v1620_v10 = vld [vmem:[%s2240_s1 + $0x10] sm:$0xff]   ;;  %v185_v40 = vunpack.c.0.s8 %v184_v37 }
   0x4   :  { %v1613_v3 = vld [vmem:[%s2240_s1 + $0x80] sm:$0xff]   ;;  %1466 = vmatpush3.bf16.msra.mxu0 %v1612_v2  ;;  %v1617_v7 = vld [vmem:[%s2240_s1 + $0x88] sm:$0xff]   ;;  %v1621_v11 = vld [vmem:[%s2240_s1 + $0x90] sm:$0xff]  }
   0x5   :  { %1488 = vmatpush3.bf16.msra.mxu1 %v1613_v3  ;;  %1467 = vmatprep.subr.bf16.mxu0 %v1614_v4  ;;  %v1622_v12 = vld [vmem:[%s2240_s1 + $0x58] sm:$0xff]   ;;  %v1626_v16 = vld [vmem:[%s2240_s1 + $0x60] sm:$0xff]   ;;  %v1630_v20 = vld [vmem:[%s2240_s1 + $0x68] sm:$0xff]   ;;  %v1957_v41 = vsub.s32 %v185_v40, %v1945_v33 }
   0x6   :  { %1489 = vmatprep.subr.bf16.mxu1 %v1615_v5  ;;  %v1623_v13 = vld [vmem:[%s2240_s1 + $0xd8] sm:$0xff]   ;;  %v1627_v17 = vld [vmem:[%s2240_s1 + $0xe0] sm:$0xff]   ;;  %v1631_v21 = vld [vmem:[%s2240_s1 + $0xe8] sm:$0xff]  }
   0x7   :  { %v1624_v14 = vld [vmem:[%s2240_s1 + $0x18] sm:$0xff]   ;;  %v1628_v18 = vld [vmem:[%s2240_s1 + $0x20] sm:$0xff]   ;;  %v1632_v22 = vld [vmem:[%s2240_s1 + $0x28] sm:$0xff]  }
   0x8   :  { %1468 = vmatpush3.bf16.msra.mxu0 %v1616_v6  ;;  %v1625_v15 = vld [vmem:[%s2240_s1 + $0x98] sm:$0xff]   ;;  %v1629_v19 = vld [vmem:[%s2240_s1 + $0xa0] sm:$0xff]   ;;  %v1633_v23 = vld [vmem:[%s2240_s1 + $0xa8] sm:$0xff]  }
   0x9   :  { %1490 = vmatpush3.bf16.msra.mxu1 %v1617_v7  ;;  %1469 = vmatprep.subr.bf16.mxu0 %v1618_v8  ;;  %v1634_v24 = vld [vmem:[%s2240_s1 + $0x70] sm:$0xff]   ;;  %v1638_v29 = vld [vmem:[%s2240_s1 + $0x78] sm:$0xff]   ;;  %v52_v34 = vld [vmem:[%s2239_s0] sm:$0xff] }
   0xa   :  { %1491 = vmatprep.subr.bf16.mxu1 %v1619_v9  ;;  %v1635_v25 = vld [vmem:[%s2240_s1 + $0xf0] sm:$0xff]   ;;  %v1639_v30 = vld [vmem:[%s2240_s1 + $0xf8] sm:$0xff]   ;;  %v1643_v35 = vld [vmem:[%s2240_s1 + $0x140] sm:$0xff]   ;;  %v182_v39 = vcombine.high %v52_v34, %v52_v34  ;;  %v189_v42 = vrot.slane %v52_v34, %v1957_v41 }
   0xb   :  { %v1636_v26 = vld [vmem:[%s2240_s1 + $0x30] sm:$0xff]   ;;  %v1640_v31 = vld [vmem:[%s2240_s1 + $0x38] sm:$0xff]   ;;  %v1644_v38 = vld [vmem:[%s2240_s1 + $0x1c0] sm:$0xff]  }
   0xc   :  { %1470 = vmatpush3.bf16.msra.mxu0 %v1620_v10  ;;  %v1637_v27 = vld [vmem:[%s2240_s1 + $0xb0] sm:$0xff]   ;;  %v1641_v32 = vld [vmem:[%s2240_s1 + $0xb8] sm:$0xff]   ;;  %v1961_v43 = vrot.slane %v182_v39, %v1957_v41  ;;  %v197_v44 = vcombine.high %v189_v42, %v189_v42  ;;  %v205_v45 = vrot.slane %v189_v42, %v1957_v41  ;;  %v1645_v47 = vld [vmem:[%s2240_s1 + $0x100] sm:$0xff]  }
   0xd   :  { %1492 = vmatpush3.bf16.msra.mxu1 %v1621_v11  ;;  %1471 = vmatprep.subr.bf16.mxu0 %v1622_v12  ;;  %v1646_v49 = vld [vmem:[%s2240_s1 + $0x180] sm:$0xff]   ;;  %v1647_v52 = vld [vmem:[%s2240_s1 + $0x148] sm:$0xff]   ;;  %v1651_v58 = vld [vmem:[%s2240_s1 + $0x150] sm:$0xff]  }
   0xe   :  { %1493 = vmatprep.subr.bf16.mxu1 %v1623_v13  ;;  %v198_v46 = vcombine.high %v1961_v43, %v1961_v43  ;;  %v219_v48 = vrot.slane %v197_v44, %v1957_v41  ;;  %v227_v51 = vcombine.high %v205_v45, %v205_v45  ;;  %v1648_v54 = vld [vmem:[%s2240_s1 + $0x1c8] sm:$0xff]   ;;  %v1652_v59 = vld [vmem:[%s2240_s1 + $0x1d0] sm:$0xff]   ;;  %v1655_v62 = vld [vmem:[%s2240_s1 + $0x158] sm:$0xff]  }
   0xf   :  { %v1649_v55 = vld [vmem:[%s2240_s1 + $0x108] sm:$0xff]   ;;  %v1653_v60 = vld [vmem:[%s2240_s1 + $0x110] sm:$0xff]   ;;  %v1656_v63 = vld [vmem:[%s2240_s1 + $0x1d8] sm:$0xff]  }
  0x10   :  { %1472 = vmatpush3.bf16.msra.mxu0 %v1624_v14  ;;  %v226_v50 = vrot.slane %v198_v46, %v1957_v41  ;;  %655 = vmatprep.mubr.bf16.mxu0 %v219_v48  ;;  %v229_v53 = vcombine.high %v219_v48, %v219_v48  ;;  %v1650_v57 = vld [vmem:[%s2240_s1 + $0x188] sm:$0xff]   ;;  %v1654_v61 = vld [vmem:[%s2240_s1 + $0x190] sm:$0xff]   ;;  %v1657_v0 = vld [vmem:[%s2240_s1 + $0x118] sm:$0xff]  }
  0x11   :  { %1494 = vmatpush3.bf16.msra.mxu1 %v1625_v15  ;;  %1473 = vmatprep.subr.bf16.mxu0 %v1626_v16  ;;  %v1658_v1 = vld [vmem:[%s2240_s1 + $0x198] sm:$0xff]   ;;  %v1659_v2 = vld [vmem:[%s2240_s1 + $0x160] sm:$0xff]   ;;  %v1663_v6 = vld [vmem:[%s2240_s1 + $0x168] sm:$0xff]  }
  0x12   :  { %1495 = vmatprep.subr.bf16.mxu1 %v1627_v17  ;;  %v230_v56 = vcombine.high %v226_v50, %v226_v50  ;;  %695 = vmatprep.mubr.bf16.mxu1 %v229_v53  ;;  %v1660_v3 = vld [vmem:[%s2240_s1 + $0x1e0] sm:$0xff]   ;;  %v1664_v7 = vld [vmem:[%s2240_s1 + $0x1e8] sm:$0xff]   ;;  %v1667_v10 = vld [vmem:[%s2240_s1 + $0x170] sm:$0xff]  }
  0x13   :  { %v1661_v4 = vld [vmem:[%s2240_s1 + $0x120] sm:$0xff]   ;;  %v1665_v8 = vld [vmem:[%s2240_s1 + $0x128] sm:$0xff]   ;;  %v1668_v11 = vld [vmem:[%s2240_s1 + $0x1f0] sm:$0xff]  }
  0x14   :  { %1474 = vmatpush3.bf16.msra.mxu0 %v1628_v18  ;;  %v1662_v5 = vld [vmem:[%s2240_s1 + $0x1a0] sm:$0xff]   ;;  %v1666_v9 = vld [vmem:[%s2240_s1 + $0x1a8] sm:$0xff]   ;;  %v1669_v12 = vld [vmem:[%s2240_s1 + $0x130] sm:$0xff]   ;;  %v212_v18 = vrot.slane %v1961_v43, %v1957_v41 }
  0x15   :  { %1496 = vmatpush3.bf16.msra.mxu1 %v1629_v19  ;;  %1475 = vmatprep.subr.bf16.mxu0 %v1630_v20  ;;  %v1671_v13 = vld [vmem:[%s2240_s1 + $0x178] sm:$0xff]   ;;  %v1670_v14 = vld [vmem:[%s2240_s1 + $0x1b0] sm:$0xff]  }
  0x16   :  { %1497 = vmatprep.subr.bf16.mxu1 %v1631_v21  ;;  %v1672_v15 = vld [vmem:[%s2240_s1 + $0x1f8] sm:$0xff]   ;;  %v228_v19 = vcombine.high %v212_v18, %v212_v18 }
  0x17   :  { %v1673_v16 = vld [vmem:[%s2240_s1 + $0x138] sm:$0xff]  }
  0x18   :  { %1476 = vmatpush3.bf16.msra.mxu0 %v1632_v22  ;;  %v1674_v17 = vld [vmem:[%s2240_s1 + $0x1b8] sm:$0xff]  }
  0x19   :  { %1498 = vmatpush3.bf16.msra.mxu1 %v1633_v23  ;;  %1477 = vmatprep.subr.bf16.mxu0 %v1634_v24 }
  0x1a   :  { %1499 = vmatprep.subr.bf16.mxu1 %v1635_v25 }
  0x1c   :  { %1478 = vmatpush3.bf16.msra.mxu0 %v1636_v26 }
  0x1d   :  { %1500 = vmatpush3.bf16.msra.mxu1 %v1637_v27  ;;  %1479 = vmatprep.subr.bf16.mxu0 %v1638_v29 }
  0x1e   :  { %1501 = vmatprep.subr.bf16.mxu1 %v1639_v30 }
  0x20   :  { %1480 = vmatpush3.bf16.msra.mxu0 %v1640_v31 }
  0x21   :  { %1502 = vmatpush3.bf16.msra.mxu1 %v1641_v32  ;;  %1509 = vmatprep.subr.bf16.mxu0 %v1643_v35 }
  0x22   :  { %1531 = vmatprep.subr.bf16.mxu1 %v1644_v38 }
  0x23   :  { %656 = vmatmul.mubr.bf16.vlgmr.msra.gmra.mrb[0].mxu0 %v205_v45 }
  0x24   :  { %1510 = vmatpush3.bf16.msra.mxu0 %v1645_v47  ;;  %696 = vmatmul.mubr.bf16.vlgmr.msra.gmra.mrb[0].mxu1 %v227_v51 }
  0x25   :  { %1511 = vmatprep.subr.bf16.mxu0 %v1647_v52  ;;  %1532 = vmatpush3.bf16.msra.mxu1 %v1646_v49 }
  0x26   :  { %735 = vmatprep.mubr.bf16.mxu0 %v226_v50  ;;  %1533 = vmatprep.subr.bf16.mxu1 %v1648_v54 }
  0x27   :  { %775 = vmatprep.mubr.bf16.mxu1 %v230_v56 }
  0x28   :  { %1512 = vmatpush3.bf16.msra.mxu0 %v1649_v55 }
  0x29   :  { %1513 = vmatprep.subr.bf16.mxu0 %v1651_v58  ;;  %1534 = vmatpush3.bf16.msra.mxu1 %v1650_v57 }
  0x2a   :  { %1535 = vmatprep.subr.bf16.mxu1 %v1652_v59 }
  0x2c   :  { %1514 = vmatpush3.bf16.msra.mxu0 %v1653_v60 }
  0x2d   :  { %1515 = vmatprep.subr.bf16.mxu0 %v1655_v62  ;;  %1536 = vmatpush3.bf16.msra.mxu1 %v1654_v61 }
  0x2e   :  { %1537 = vmatprep.subr.bf16.mxu1 %v1656_v63 }
  0x30   :  { %1516 = vmatpush3.bf16.msra.mxu0 %v1657_v0 }
  0x31   :  { %1517 = vmatprep.subr.bf16.mxu0 %v1659_v2  ;;  %1538 = vmatpush3.bf16.msra.mxu1 %v1658_v1 }
  0x32   :  { %1539 = vmatprep.subr.bf16.mxu1 %v1660_v3 }
  0x34   :  { %1518 = vmatpush3.bf16.msra.mxu0 %v1661_v4 }
  0x35   :  { %1519 = vmatprep.subr.bf16.mxu0 %v1663_v6  ;;  %1540 = vmatpush3.bf16.msra.mxu1 %v1662_v5 }
  0x36   :  { %1541 = vmatprep.subr.bf16.mxu1 %v1664_v7 }
  0x38   :  { %1520 = vmatpush3.bf16.msra.mxu0 %v1665_v8 }
  0x39   :  { %1521 = vmatprep.subr.bf16.mxu0 %v1667_v10  ;;  %1542 = vmatpush3.bf16.msra.mxu1 %v1666_v9 }
  0x3a   :  { %1543 = vmatprep.subr.bf16.mxu1 %v1668_v11 }
  0x3c   :  { %1522 = vmatpush3.bf16.msra.mxu0 %v1669_v12 }
  0x3d   :  { %1523 = vmatprep.subr.bf16.mxu0 %v1671_v13  ;;  %1544 = vmatpush3.bf16.msra.mxu1 %v1670_v14 }
  0x3e   :  { %1545 = vmatprep.subr.bf16.mxu1 %v1672_v15 }
  0x40   :  { %1524 = vmatpush3.bf16.msra.mxu0 %v1673_v16 }
  0x41   :  { %1546 = vmatpush3.bf16.msra.mxu1 %v1674_v17 }
  0x43   :  { %736 = vmatmul.mubr.bf16.vlgmr.msra.gmra.mrb[4].mxu0 %v212_v18 }
  0x44   :  { %776 = vmatmul.mubr.bf16.vlgmr.msra.gmra.mrb[4].mxu1 %v228_v19 }
  0x45   :  { %20 = vsyncpa [#allocation6], 0  ;;  %v1675_v20 = vld [vmem:[%s2243_s4] ss:$8 sps:$4 sm:$0xff]   ;;  %v1677_v21 = vld [vmem:[%s2243_s4 + $0x4] ss:$8 sps:$4 sm:$0xff]  }
  0x46   :  { %v1680_v22 = vld [vmem:[%s2243_s4 + $0x14] ss:$8 sps:$4 sm:$0xff]   ;;  %973 = vmatprep.subr.bf16.mxu1 %v1677_v21  ;;  %v1678_v23 = vld [vmem:[%s2243_s4 + $0x10] ss:$8 sps:$4 sm:$0xff]   ;;  %v1683_v24 = vld [vmem:[%s2243_s4 + $0x24] ss:$8 sps:$4 sm:$0xff]  }
  0x47   :  { %974 = vmatpush1.bf16.msra.mxu1 %v1675_v20  ;;  %v1681_v25 = vld [vmem:[%s2243_s4 + $0x20] ss:$8 sps:$4 sm:$0xff]   ;;  %v1774_v26 = vmov 0.0   ;;  %v1686_v27 = vld [vmem:[%s2243_s4 + $0x34] ss:$8 sps:$4 sm:$0xff]   ;;  %vm845_vm0 = vcmask 1040384  }
  0x48   :  { %975 = vmatprep.subr.bf16.mxu1 %v1680_v22  ;;  %50 = vst [vmem:[#allocation2] sm:$0x3] %v1774_v26  ;;  %v1684_v28 = vld [vmem:[%s2243_s4 + $0x30] ss:$8 sps:$4 sm:$0xff]   ;;  %v1689_v29 = vld [vmem:[%s2243_s4 + $0x44] ss:$8 sps:$4 sm:$0xff]  }
  0x49   :  { %v1687_v30 = vld [vmem:[%s2243_s4 + $0x40] ss:$8 sps:$4 sm:$0xff]   ;;  %v1690_v31 = vld [vmem:[%s2243_s4 + $0x50] ss:$8 sps:$4 sm:$0xff]   ;;  %v1692_v32 = vld [vmem:[%s2243_s4 + $0x54] ss:$8 sps:$4 sm:$0xff]  }
  0x4a   :  { %v1420_v34 = vld.sshfl [vmem:[%s2244_s5] sm:$0x11 pattern:$0x75316420]  ;;  %v1775_v35 = vmov 0   ;;  %vm841_vm1 = vcmask 15360  }
  0x4b   :  { %976 = vmatpush1.bf16.msra.mxu1 %v1678_v23  ;;  %884 = vmatprep.mubr.bf16.mxu0 %v1775_v35  ;;  %v826_v36 = vcombine.high %v1420_v34, %v1420_v34  ;;  %v833_v37 = vrot.slane %v1420_v34, %v1957_v41  ;;  %v1695_v38 = vld [vmem:[%s2243_s4 + $0x64] ss:$8 sps:$4 sm:$0xff]   ;;  %v815_v39 = vld [vmem:[%s2242_s3] sm:$0x3]  ;;  %v1698_v44 = vld [vmem:[%s2243_s4 + $0x74] ss:$8 sps:$4 sm:$0xff]  }
  0x4c   :  { %977 = vmatprep.subr.bf16.mxu1 %v1683_v24  ;;  %1005 = vmatprep.mubr.bf16.mxu1 %v1775_v35  ;;  %v1693_v43 = vld [vmem:[%s2243_s4 + $0x60] ss:$8 sps:$4 sm:$0xff]   ;;  %v816_v45 = vpack.c.bf16 %v815_v39, %v815_v39  ;;  %v1703_v50 = vld [vmem:[%s2246_s7 + $0x50] sm:$0xff]   ;;  %v1705_v52 = vld [vmem:[%s2246_s7 + $0x58] sm:$0xff]   ;;  %vm1776_vm2 = vmmov 0   ;;  %vm1325_vm3 = vcmask 8192  }
  0x4d   :  { %v840_v40 = vrot.slane %v826_v36, %v1957_v41  ;;  %v847_v42 = vsel %vm845_vm0, %v833_v37, 0  ;;  %v1696_v41 = vld [vmem:[%s2243_s4 + $0x70] ss:$8 sps:$4 sm:$0xff]   ;;  %v1699_v46 = vld [vmem:[%s2246_s7 + $0x40] sm:$0xff]   ;;  %v1701_v48 = vld [vmem:[%s2246_s7 + $0x48] sm:$0xff]  }
  0x4e   :  { %v1700_v47 = vld [vmem:[%s2246_s7] sm:$0xff]   ;;  %v1702_v49 = vld [vmem:[%s2246_s7 + $0x8] sm:$0xff]   ;;  %v1704_v51 = vld [vmem:[%s2246_s7 + $0x10] sm:$0xff]  }
  0x4f   :  { %978 = vmatpush1.bf16.msra.mxu1 %v1681_v25  ;;  %1421 = vmatprep.subr.msk.bf16.mxu0 %vm845_vm0, %v840_v40  ;;  %v1706_v53 = vld [vmem:[%s2246_s7 + $0x18] sm:$0xff]   ;;  %v1707_v54 = vld [vmem:[%s2246_s7 + $0x60] sm:$0xff]   ;;  %v1709_v3 = vld [vmem:[%s2246_s7 + $0x68] sm:$0xff]   ;;  %v1018_v40 = vsub.s32 0, %v1945_v33 }
  0x50   :  { %979 = vmatprep.subr.bf16.mxu1 %v1686_v27  ;;  %853 = vmatpush1.bf16.msra.mxu0 %v847_v42  ;;  %v1708_v55 = vld [vmem:[%s2246_s7 + $0x20] sm:$0xff]   ;;  %v1716_v35 = vld [vmem:[%s2248_s9 + $0x8] sm:$0xff]   ;;  %v1717_v36 = vld [vmem:[%s2248_s9 + $0x10] sm:$0xff]  }
  0x51   :  { %1553 = vmatprep.subr.bf16.mxu0 %v1699_v46  ;;  %v51_v14 = vld [vmem:[#allocation2] sm:$0x3]  ;;  %v1718_v37 = vld [vmem:[%s2248_s9 + $0x18] sm:$0xff]   ;;  %v1720_v39 = vld [vmem:[%s2248_s9 + $0x28] sm:$0xff]  }
  0x52   :  { %v1419_v18 = vld [vmem:[%s2241_s2] ss:$0 sm:$0xff] }
  0x53   :  { %980 = vmatpush1.bf16.msra.mxu1 %v1684_v28  ;;  %1422 = vmatmul.mubr.msk.bf16.vlgmr.msra.gmra.mrb[8].mxu0 %vm841_vm1, %v816_v45  ;;  %v1710_v28 = vld [vmem:[%s2246_s7 + $0x28] sm:$0xff]   ;;  %v1715_v34 = vld [vmem:[%s2248_s9] sm:$0xff]  }
  0x54   :  { %981 = vmatprep.subr.bf16.mxu1 %v1689_v29  ;;  %1554 = vmatpush3.bf16.msra.mxu0 %v1700_v47  ;;  %v1711_v29 = vld [vmem:[%s2246_s7 + $0x70] sm:$0xff]   ;;  %v1014_v42 = vld [vmem:[%s2245_s6] sm:$0x3] }
  0x55   :  { %1555 = vmatprep.subr.bf16.mxu0 %v1701_v48 }
  0x57   :  { %982 = vmatpush1.bf16.msra.mxu1 %v1687_v30  ;;  %v1712_v30 = vld [vmem:[%s2246_s7 + $0x30] sm:$0xff]  }
  0x58   :  { %983 = vmatprep.subr.bf16.mxu1 %v1692_v32  ;;  %1556 = vmatpush3.bf16.msra.mxu0 %v1702_v49  ;;  %v1714_v32 = vld [vmem:[%s2246_s7 + $0x38] sm:$0xff]  }
  0x59   :  { %1557 = vmatprep.subr.bf16.mxu0 %v1703_v50 }
  0x5b   :  { %984 = vmatpush1.bf16.msra.mxu1 %v1690_v31  ;;  %v1713_v31 = vld [vmem:[%s2246_s7 + $0x78] sm:$0xff]  }
  0x5c   :  { %985 = vmatprep.subr.bf16.mxu1 %v1695_v38  ;;  %1558 = vmatpush3.bf16.msra.mxu0 %v1704_v51  ;;  %v1719_v38 = vld [vmem:[%s2248_s9 + $0x20] sm:$0xff]  }
  0x5d   :  { %1559 = vmatprep.subr.bf16.mxu0 %v1705_v52 }
  0x5f   :  { %986 = vmatpush1.bf16.msra.mxu1 %v1693_v43  ;;  %v1022_v43 = vsub.s32 1, %v1945_v33  ;;  %v1721_v33 = vld [vmem:[%s2248_s9 + $0x30] sm:$0xff]  }
  0x60   :  { %987 = vmatprep.subr.bf16.mxu1 %v1698_v44  ;;  %1560 = vmatpush3.bf16.msra.mxu0 %v1706_v53  ;;  %v1019_v44 = vrot.slane %v1014_v42, %v1018_v40 }
  0x61   :  { %1561 = vmatprep.subr.bf16.mxu0 %v1707_v54 }
  0x63   :  { %988 = vmatpush1.bf16.msra.mxu1 %v1696_v41  ;;  %v1023_v41 = vrot.slane %v1014_v42, %v1022_v43 }
  0x64   :  { %1584 = vmatprep.subr.bf16.mxu1 %v1774_v26  ;;  %1562 = vmatpush3.bf16.msra.mxu0 %v1708_v55 }
  0x65   :  { %1563 = vmatprep.subr.bf16.mxu0 %v1709_v3  ;;  %v1322_v3 = vld [vmem:[%s2250_s11] sm:$0x1] }
  0x68   :  { %1564 = vmatpush3.bf16.msra.mxu0 %v1710_v28 }
  0x69   :  { %1565 = vmatprep.subr.bf16.mxu0 %v1711_v29 }
  0x6c   :  { %1566 = vmatpush3.bf16.msra.mxu0 %v1712_v30 }
  0x6d   :  { %1567 = vmatprep.subr.bf16.mxu0 %v1713_v31 }
  0x70   :  { %1568 = vmatpush3.bf16.msra.mxu0 %v1714_v32 }
  0xf6   :  { %v1481_v56 = vpop.f32.mrb[0].mxu0 }
  0xf7   :  { %v1482_v57 = vpop.f32.mrb[1].mxu0  ;;  %v1503_v58 = vpop.f32.mrb[0].mxu1 }
  0xf8   :  { %v1483_v59 = vadd.f32 %v1482_v57, %v1481_v56  ;;  %v1484_v60 = vpop.f32.mrb[2].mxu0  ;;  %v1504_v61 = vpop.f32.mrb[1].mxu1  ;;  %v1722_v57 = vld [vmem:[%s2248_s9 + $0x38] sm:$0xff]   ;;  %s1777_s9 = smov [#allocation5]  }
  0xf9   :  { %v1485_v62 = vpop.f32.mrb[3].mxu0  ;;  %v1505_v63 = vadd.f32 %v1504_v61, %v1503_v58  ;;  %v1506_v0 = vpop.f32.mrb[2].mxu1  ;;  %s1343_s18 = sshll.u32 %s1777_s9, 4  ;;  %s1344_s18 = int_to_ptr.vmem [resolvable:$true] %s1343_s18 }
  0xfa   :  { %v1507_v1 = vpop.f32.mrb[3].mxu1  ;;  %s1729_s1 = scalar_lea.vmem %s1344_s18, 32  ;;  %p1730_p1 = scmp.lt.s32.totalorder %s1344_s18, %s1344_s18 }
  0xfb   :  { %v698_v2 = vadd.f32 %v1505_v63, %v1483_v59  ;;  %v1439_v59 = vld [vmem:[%s2247_s8] ss:$0 sm:$0xff]  ;;  %s1725_s8 = scalar_lea.vmem %s1344_s18, 16 }
  0xfc   :  { %p1726_p0 = scmp.ne.s32.totalorder %s1344_s18, %s1725_s8  ;;  %p1731_p2 = scmp.lt.s32.totalorder %s1729_s1, %s1725_s8 }
  0xfe   :  { %p1732_p3 = por %p1731_p2, %p1730_p1 }
 0x100   :  { %p1733_p4 = pnand %p1732_p3, %p1726_p0 }
 0x116   :  { %v1525_v4 = vpop.f32.mrb[4].mxu0 }
 0x117   :  { %v1526_v5 = vpop.f32.mrb[5].mxu0  ;;  %v1547_v6 = vpop.f32.mrb[4].mxu1 }
 0x118   :  { %v1527_v7 = vadd.f32 %v1526_v5, %v1525_v4  ;;  %v1528_v8 = vpop.f32.mrb[6].mxu0  ;;  %v1548_v9 = vpop.f32.mrb[5].mxu1  ;;  %v1323_v4 = vmul.f32 1.442695, %v1322_v3 }
 0x119   :  { %v1529_v10 = vpop.f32.mrb[7].mxu0  ;;  %v1549_v12 = vadd.f32 %v1548_v9, %v1547_v6  ;;  %v1550_v13 = vpop.f32.mrb[6].mxu1 }
 0x11a   :  { %v738_v11 = vadd.f32 %v1527_v7, %v698_v2  ;;  %v1551_v15 = vpop.f32.mrb[7].mxu1  ;;  %1723 = vpow2.f32 %v1323_v4 }
 0x11c   :  { %v778_v16 = vadd.f32 %v1549_v12, %v738_v11 }
 0x11e   :  { %v783_v17 = vadd.f32 %v778_v16, %v51_v14 }
 0x120   :  { %784 = vst [vmem:[#allocation2] sm:$0x3] %v783_v17 }
 0x126   :  { %v886_v23 = vpop.f32.mrb[8].mxu0 }
 0x127   :  { %v788_v19 = vld [vmem:[#allocation2] sm:$0x3]  ;;  %v888_v24 = vpop.f32.mrb[9].mxu0 }
 0x128   :  { %v796_v20 = vadd.f32 %v1419_v18, %v788_v19  ;;  %v890_v25 = vpop.f32.mrb[10].mxu0 }
 0x129   :  { %v891_v27 = vpop.f32.mrb[11].mxu0 }
 0x12a   :  { %v797_v21 = vmax.f32 %v796_v20, 0.0 }
 0x12c   :  { %v798_v22 = vpack.c.bf16 %v797_v21, %v797_v21 }
 0x12e   :  { %1006 = vmatmul.mubr.bf16.vlgmr.msra.gmra.mrb[8].mxu1 %v798_v22 }
 0x12f   :  { %1585 = vmatpush3.bf16.msra.mxu1 %v1715_v34  ;;  %1600 = vmatprep.mubr.msk.bf16.mxu1 %vm1776_vm2, %v1774_v26 }
 0x130   :  { %1586 = vmatprep.subr.bf16.mxu1 %v1774_v26 }
 0x133   :  { %1587 = vmatpush3.bf16.msra.mxu1 %v1716_v35 }
 0x134   :  { %1588 = vmatprep.subr.bf16.mxu1 %v1774_v26 }
 0x137   :  { %1589 = vmatpush3.bf16.msra.mxu1 %v1717_v36 }
 0x138   :  { %1590 = vmatprep.subr.bf16.mxu1 %v1774_v26 }
 0x13b   :  { %1591 = vmatpush3.bf16.msra.mxu1 %v1718_v37 }
 0x13c   :  { %1592 = vmatprep.subr.bf16.mxu1 %v1774_v26 }
 0x13f   :  { %1593 = vmatpush3.bf16.msra.mxu1 %v1719_v38 }
 0x140   :  { %1594 = vmatprep.subr.bf16.mxu1 %v1774_v26 }
 0x143   :  { %1595 = vmatpush3.bf16.msra.mxu1 %v1720_v39 }
 0x144   :  { %1596 = vmatprep.subr.bf16.mxu1 %v1774_v26 }
 0x147   :  { %1597 = vmatpush3.bf16.msra.mxu1 %v1721_v33 }
 0x148   :  { %1598 = vmatprep.subr.bf16.mxu1 %v1774_v26  ;;  %v1724_v26 = vpop.eup %1723 }
 0x149   :  { %1326 = vst.msk [vmem:[#allocation5] sm:$0x1] %vm1325_vm3, %v1724_v26 }
 0x14b   :  { %1599 = vmatpush3.bf16.msra.mxu1 %v1722_v57 }
 0x201   :  { %v1007_v45 = vpop.f32.mrb[8].mxu1 }
 0x202   :  { %v1008_v46 = vadd.f32 %v1007_v45, %v886_v23  ;;  %v1009_v47 = vpop.f32.mrb[9].mxu1 }
 0x203   :  { %v1010_v48 = vadd.f32 %v1009_v47, %v888_v24  ;;  %v1011_v49 = vpop.f32.mrb[10].mxu1 }
 0x204   :  { %v1026_v50 = vadd.f32 %v1019_v44, %v1008_v46  ;;  %v1012_v51 = vpop.f32.mrb[11].mxu1 }
 0x205   :  { %v1027_v52 = vadd.f32 %v1023_v41, %v1010_v48 }
 0x206   :  { %v1028_v53 = vmax.f32 %v1026_v50, 0.0 }
 0x207   :  { %v1029_v54 = vmax.f32 %v1027_v52, 0.0 }
 0x208   :  { %v1030_v56 = vpack.c.bf16 %v1028_v53, %v1028_v53 }
 0x209   :  { %v1031_v55 = vpack.c.bf16 %v1029_v54, %v1029_v54 }
 0x20b   :  { %1199 = vmatprep.mubr.bf16.mxu0 %v1031_v55 }
 0x20c   :  { %1200 = vmatmul.mubr.bf16.vlgmr.msra.gmra.mrb[12].mxu0 %v1030_v56 }
 0x2df   :  { %v1569_v58 = vpop.f32.mrb[12].mxu0 }
 0x2e0   :  { %v1570_v60 = vpop.f32.mrb[13].mxu0 }
 0x2e1   :  { %v1571_v61 = vadd.f32 %v1570_v60, %v1569_v58  ;;  %v1572_v62 = vpop.f32.mrb[14].mxu0 }
 0x2e2   :  { %v1573_v63 = vpop.f32.mrb[15].mxu0 }
 0x2e3   :  { %v1202_v0 = vadd.f32 %v1571_v61, %v1439_v59 }
 0x2e5   :  { %v1207_v1 = vmax.f32 %v1202_v0, 0.0 }
 0x2e7   :  { %v1208_v2 = vpack.c.bf16 %v1207_v1, %v1207_v1 }
 0x2e9   :  { %1601 = vmatmul.mubr.bf16.vlgmr.msra.gmra.mrb[12].mxu1 %v1208_v2 }
 0x2ea   :  { %1736 = shalt.err (!%p1733_p4)
}
 0x2eb   :  { %s1737_s11 = scalar_lea.hbm %s2252_s13, 16 }
 0x2ec   :  { %p1738_p5 = scmp.ne.s32.totalorder %s2252_s13, %s1737_s11  ;;  %p1741_p6 = scmp.lt.u32.totalorder %s1737_s11, %s2252_s13 }
 0x2ee   :  { %p1743_p7 = pnand %p1741_p6, %p1738_p5 }
 0x2f0   :  { %1746 = shalt.err (!%p1743_p7)
}
 0x2f1   :  { %1346 = dma.vmem_to_hbm [thread:$0]  %s1344_s18, 16, %s2252_s13, [#allocation6]   ;;  %v1456_v5 = vld [vmem:[%s2249_s10] ss:$0 sm:$0xff]  ;;  %vm1320_vm4 = vcmask 9216  }
 0x2f2   :  { %s1778_s0 = smov [#allocation3]  }
 0x2f3   :  { %s1333_s27 = sshll.u32 %s1778_s0, 4  ;;  %s1334_s27 = int_to_ptr.vmem [resolvable:$true] %s1333_s27 }
 0x2f4   :  { %s1747_s3 = scalar_lea.vmem %s1334_s27, 32  ;;  %p1752_p9 = scmp.lt.s32.totalorder %s1334_s27, %s1334_s27 }
 0x2f5   :  { %p1748_p8 = scmp.ne.s32.totalorder %s1334_s27, %s1747_s3  ;;  %p1753_p10 = scmp.lt.s32.totalorder %s1747_s3, %s1747_s3 }
 0x2f7   :  { %p1754_p11 = por %p1753_p10, %p1752_p9 }
 0x2f9   :  { %p1755_p12 = pnand %p1754_p11, %p1748_p8 }
 0x3bc   :  { %v1314_v6 = vpop.f32.mrb[12].mxu1 }
 0x3bd   :  { %v1315_v7 = vadd.f32 %v1456_v5, %v1314_v6  ;;  %v1602_v8 = vpop.f32.mrb[13].mxu1 }
 0x3be   :  { %v1317_v9 = vpop.f32.mrb[14].mxu1 }
 0x3bf   :  { %v1603_v10 = vpop.f32.mrb[15].mxu1  ;;  %1321 = vst.msk [vmem:[#allocation3] sm:$0x3] %vm1320_vm4, %v1315_v7 }
 0x3c0   :  { %1758 = shalt.err (!%p1755_p12)
}
 0x3c1   :  { %s1759_s10 = scalar_lea.hbm %s2251_s12, 32 }
 0x3c2   :  { %p1760_p13 = scmp.ne.s32.totalorder %s2251_s12, %s1759_s10  ;;  %p1763_p0 = scmp.lt.u32.totalorder %s1759_s10, %s2251_s12 }
 0x3c4   :  { %p1765_p1 = pnand %p1763_p0, %p1760_p13 }
 0x3c6   :  { %1768 = shalt.err (!%p1765_p1)
}
 0x3c7   :  { %1336 = dma.vmem_to_hbm [thread:$0]  %s1334_s27, 32, %s2251_s12, [#allocation4]  }
 0x3c8   :  { %1769 = dma.done.wait [#allocation4], 32  }
 0x3c9   :  { %1770 = vsyncadd [#allocation4], 4294967264 }
 0x3ca   :  { %1771 = dma.done.wait [#allocation6], 16  }
 0x3cb   :  { %1772 = vsyncadd [#allocation6], 4294967280 }
 0x3cc   :  { %1353 = vsyncpa [#allocation4], 1 }
 0x3cd   :  { %1354 = vsyncpa [#allocation6], 1 }

</bundles_post_ra>
